<compile_context>
chip_gen: v5e
topology: v5e:2x2
jax: 0.10.0
libtpu: 0.0.40
codegen_flags: <defaults>
</compile_context>

<pallas_src>
import math

import jax
import jax.numpy as jnp
from jax import lax
from jax.experimental import pallas as pl
from jax.experimental.pallas import tpu as pltpu

MXU_DTYPE = jnp.bfloat16              # MXU operand dtype (f32 accumulation)
VMEM_LIMIT = 32 * 1024 * 1024         # fits v7x (64 MiB phys) / v6e / v5e


def _silu(x):
    return x * (1.0 / (1.0 + jnp.exp(-x)))


def _softplus(x):
    # matches torch.nn.functional.softplus (threshold=20)
    return jnp.where(x > 20.0, x, jnp.log(1.0 + jnp.exp(jnp.minimum(x, 20.0))))


def _full_spec(arr):
    n = arr.ndim
    return pl.BlockSpec(arr.shape, lambda *args: (0,) * n)


def _pick_tm(bsz, L, target_rows):
    """Largest M-tile that is a whole number of sequences and <= target_rows."""
    s_max = max(1, target_rows // L)
    s = 1
    for cand in range(min(bsz, s_max), 0, -1):
        if bsz % cand == 0:
            s = cand
            break
    tm = s * L
    bl = bsz * L
    if tm != bl and tm % 8 != 0:      # keep the (8,128) sublane rule
        tm = bl
    return tm


def _scan_chunk(L, max_t=8):
    for t in range(min(L, max_t), 0, -1):
        if L % t == 0:
            return t
    return 1


def _pick_ltile(L, target=256):
    if L <= target:
        return L
    for t in range(target, 7, -1):
        if L % t == 0 and t % 8 == 0:
            return t
    return L


# ---------------------------------------------------------------------------
# Kernel 1: fused in_proj + causal conv + fused [dt|B|C] projection + softplus.
# Tiled over M = B*L rows; tiles are whole sequences.
# ---------------------------------------------------------------------------
def _prescan_kernel(x_ref, pos_ref, w_in_ref, conv_w_ref, conv_b_ref,
                    w_big_ref, b_dt_ref,
                    xc_ref, z_ref, dt_ref, bc_ref):
    d_conv, d_inner = conv_w_ref.shape
    d_state2 = bc_ref.shape[1]

    # Single merged in_proj (x | z branches): one MXU pass, bf16 ops, f32 acc.
    x = x_ref[...].astype(w_in_ref.dtype)
    xz = jnp.dot(x, w_in_ref[...], preferred_element_type=jnp.float32)
    xpart = xz[:, :d_inner]
    z_ref[...] = xz[:, d_inner:]

    # Causal depthwise conv on the flat (rows, d_inner) tile: sublane rolls on
    # the XLU + a position mask.  Tiles start at sequence boundaries, so rows
    # with pos < s are exactly (a) rolled-around garbage at the tile top and
    # (b) rows that would otherwise leak across a sequence boundary -> zeroed.
    cw = conv_w_ref[...]
    pos = pos_ref[...]                                    # (TM, 1) int32
    acc = xpart * cw[d_conv - 1:d_conv, :]                # shift-0 term
    for k in range(d_conv - 1):                           # static unroll
        s = d_conv - 1 - k                                # shift amount
        shifted = pltpu.roll(xpart, shift=s, axis=0)
        acc = acc + jnp.where(pos >= s, shifted, 0.0) * cw[k:k + 1, :]
    xc = _silu(acc + conv_b_ref[...])
    xc_ref[...] = xc

    # One lane-dense fused projection; columns = [dt(full) | B | C | pad].
    fused = jnp.dot(xc.astype(w_big_ref.dtype), w_big_ref[...],
                    preferred_element_type=jnp.float32)
    dt_ref[...] = _softplus(fused[:, :d_inner] + b_dt_ref[...])
    bc_ref[...] = fused[:, d_inner:d_inner + d_state2]


# ---------------------------------------------------------------------------
# Kernel 2: chunked selective scan + gate + out_proj, one program per batch.
# ---------------------------------------------------------------------------
def _scan_gate_out_kernel(xc_ref, dt_ref, bc_ref, z_ref, a_logT_ref, d_ref,
                          w_out_ref, o_ref, y_vmem):
    L, d_inner = xc_ref.shape
    d_state = bc_ref.shape[1] // 2
    T = _scan_chunk(L)                                    # static chunk length

    a = -jnp.exp(a_logT_ref[...])                         # (d_state, d_inner)
    d_row = d_ref[...]                                    # (1, d_inner)

    def chunk(c, h):
        t0 = pl.multiple_of(c * T, T)
        dt_c = dt_ref[pl.ds(t0, T), :]                    # (T, d_inner)
        x_c = xc_ref[pl.ds(t0, T), :]                     # (T, d_inner)
        bc_c = bc_ref[pl.ds(t0, T), :]                    # (T, 2*d_state)
        dtx_c = dt_c * x_c                                # (T, d_inner)
        # Dense EUP/VPU precompute for the whole chunk (off the critical path
        # of the recurrence).
        da_c = jnp.exp(dt_c[:, None, :] * a[None, :, :])  # (T, d_state, d_inner)
        # Hoisted (per-chunk, not per-step) transposes: columns for B and C.
        b_cols = bc_c[:, :d_state].T                      # (d_state, T)
        c_cols = bc_c[:, d_state:].T                      # (d_state, T)

        ys = []
        for t in range(T):                                # static inner unroll
            # h update: pure VPU broadcast outer product, no MXU push.
            h = da_c[t] * h + b_cols[:, t:t + 1] * dtx_c[t:t + 1, :]
            # y_t: VPU multiply + sublane (XLU) reduce instead of a 1-row matmul.
            y_t = (jnp.sum(c_cols[:, t:t + 1] * h, axis=0, keepdims=True)
                   + d_row * x_c[t:t + 1, :])
            ys.append(y_t)
        y_vmem[pl.ds(t0, T), :] = jnp.concatenate(ys, axis=0)
        return h

    h0 = jnp.zeros((d_state, d_inner), jnp.float32)
    lax.fori_loop(0, L // T, chunk, h0)

    # Fused gate + out_proj: y never leaves VMEM.
    gated = y_vmem[...] * _silu(z_ref[...])
    o_ref[...] = jnp.dot(gated.astype(w_out_ref.dtype), w_out_ref[...],
                         preferred_element_type=jnp.float32)


def mamba_layer(x, kp, prescan_rows):
    bsz, L, d_model = x.shape
    d_conv, d_inner = kp["conv_wT"].shape
    d_state = kp["a_logT"].shape[0]
    bl = bsz * L

    tm = _pick_tm(bsz, L, prescan_rows)
    grid_m = bl // tm

    x_flat = x.reshape(bl, d_model)
    pos = jnp.tile(jnp.arange(L, dtype=jnp.int32), bsz).reshape(bl, 1)

    def row_spec(width):
        return pl.BlockSpec((tm, width), lambda i: (i, 0))

    xc, z, dt, bc = pl.pallas_call(
        _prescan_kernel,
        out_shape=(
            jax.ShapeDtypeStruct((bl, d_inner), jnp.float32),   # xc
            jax.ShapeDtypeStruct((bl, d_inner), jnp.float32),   # z
            jax.ShapeDtypeStruct((bl, d_inner), jnp.float32),   # dt
            jax.ShapeDtypeStruct((bl, 2 * d_state), jnp.float32),  # [B|C]
        ),
        grid=(grid_m,),
        in_specs=[
            row_spec(d_model),
            pl.BlockSpec((tm, 1), lambda i: (i, 0)),
            _full_spec(kp["w_in"]),
            _full_spec(kp["conv_wT"]),
            _full_spec(kp["conv_b"]),
            _full_spec(kp["w_big"]),
            _full_spec(kp["b_dt"]),
        ],
        out_specs=(row_spec(d_inner), row_spec(d_inner), row_spec(d_inner),
                   row_spec(2 * d_state)),
        compiler_params=pltpu.CompilerParams(
            dimension_semantics=("parallel",),
            vmem_limit_bytes=VMEM_LIMIT),
    )(x_flat, pos, kp["w_in"], kp["conv_wT"], kp["conv_b"],
      kp["w_big"], kp["b_dt"])

    # TODO(synk): for very long L at large d_inner, also tile the L axis here
    # (carry h across an "arbitrary" grid axis) instead of whole-L blocks.
    out = pl.pallas_call(
        _scan_gate_out_kernel,
        out_shape=jax.ShapeDtypeStruct((bsz, L, d_model), jnp.float32),
        grid=(bsz,),
        in_specs=[
            pl.BlockSpec((None, L, d_inner), lambda b: (b, 0, 0)),      # xc
            pl.BlockSpec((None, L, d_inner), lambda b: (b, 0, 0)),      # dt
            pl.BlockSpec((None, L, 2 * d_state), lambda b: (b, 0, 0)),  # [B|C]
            pl.BlockSpec((None, L, d_inner), lambda b: (b, 0, 0)),      # z
            pl.BlockSpec((d_state, d_inner), lambda b: (0, 0)),         # A_logT
            pl.BlockSpec((1, d_inner), lambda b: (0, 0)),               # D
            pl.BlockSpec((d_inner, d_model), lambda b: (0, 0)),         # w_out
        ],
        out_specs=pl.BlockSpec((None, L, d_model), lambda b: (b, 0, 0)),
        scratch_shapes=[pltpu.VMEM((L, d_inner), jnp.float32)],
        compiler_params=pltpu.CompilerParams(
            dimension_semantics=("parallel",),
            vmem_limit_bytes=VMEM_LIMIT),
    )(xc.reshape(bsz, L, d_inner), dt.reshape(bsz, L, d_inner),
      bc.reshape(bsz, L, 2 * d_state), z.reshape(bsz, L, d_inner),
      kp["a_logT"], kp["D"], kp["w_out"])
    return out


# ---------------------------------------------------------------------------
# Classifier head: mean over L as an accumulated reduction + one matmul.
# ---------------------------------------------------------------------------
def classifier_head(x, w_cls, b_cls):
    bsz, L, d_model = x.shape
    num_classes = w_cls.shape[1]
    tl = _pick_ltile(L)
    inv_l = 1.0 / float(L)

    def kernel(x_ref, w_ref, b_ref, o_ref, acc_ref):
        li = pl.program_id(0)

        @pl.when(li == 0)
        def _():
            acc_ref[...] = jnp.zeros_like(acc_ref)

        acc_ref[...] += jnp.sum(x_ref[...], axis=1)       # (bsz, d_model)

        @pl.when(li == pl.num_programs(0) - 1)
        def _():
            xm = (acc_ref[...] * inv_l).astype(w_ref.dtype)
            o_ref[...] = (jnp.dot(xm, w_ref[...],
                                  preferred_element_type=jnp.float32)
                          + b_ref[...])

    return pl.pallas_call(
        kernel,
        out_shape=jax.ShapeDtypeStruct((bsz, num_classes), jnp.float32),
        grid=(L // tl,),
        in_specs=[
            pl.BlockSpec((bsz, tl, d_model), lambda l: (0, l, 0)),
            _full_spec(w_cls),
            _full_spec(b_cls),
        ],
        out_specs=pl.BlockSpec((bsz, num_classes), lambda l: (0, 0)),
        scratch_shapes=[pltpu.VMEM((bsz, d_model), jnp.float32)],
        compiler_params=pltpu.CompilerParams(
            dimension_semantics=("arbitrary",),
            vmem_limit_bytes=VMEM_LIMIT),
    )(x, w_cls, b_cls)


def mamba_classifier_forward(params, tokens, *, prescan_rows=512):
    # TODO(synk): embedding gather (dynamic row lookup) kept in plain-JAX glue;
    # a Pallas version would need scalar-prefetch / pl.Element row indexing.
    x = params["embedding"][tokens]                       # (B, L, d_model)
    for kp in params["layers"]:
        x = mamba_layer(x, kp, prescan_rows)
    return classifier_head(x, params["w_cls"], params["b_cls"])


# ---------------------------------------------------------------------------
# Parameter init (torch-style layout) and packing into the kernel layout.
# ---------------------------------------------------------------------------
def init_params(key, vocab_size, d_model, num_classes,
                num_layers=2, d_state=16, d_conv=4, expand=2):
    d_inner = expand * d_model
    dt_rank = math.ceil(d_model / 16)
    k_emb, k_cls, *k_layers = jax.random.split(key, 2 + num_layers)
    params = {
        "embedding": 0.02 * jax.random.normal(
            k_emb, (vocab_size, d_model), jnp.float32),
        "w_cls": jax.random.normal(
            k_cls, (d_model, num_classes), jnp.float32) / math.sqrt(d_model),
        "b_cls": jnp.zeros((1, num_classes), jnp.float32),
        "layers": [],
    }
    for kl in k_layers:
        ks = jax.random.split(kl, 7)
        layer = {
            "w_in_x": jax.random.normal(ks[0], (d_model, d_inner)) / math.sqrt(d_model),
            "w_in_z": jax.random.normal(ks[1], (d_model, d_inner)) / math.sqrt(d_model),
            "conv_wT": jax.random.normal(ks[2], (d_conv, d_inner)) / math.sqrt(d_conv),
            "conv_b": 0.1 * jax.random.normal(ks[3], (1, d_inner)),
            # x_proj weight: columns = [dt_lowrank | B | C]
            "w_x_fused": jax.random.normal(
                ks[4], (d_inner, dt_rank + 2 * d_state)) / math.sqrt(d_inner),
            "w_dt": jax.random.normal(ks[5], (dt_rank, d_inner)) / math.sqrt(dt_rank),
            "b_dt": jnp.full((1, d_inner), -2.0, jnp.float32),
            "a_logT": jnp.log(jnp.broadcast_to(
                jnp.arange(1, d_state + 1, dtype=jnp.float32)[:, None],
                (d_state, d_inner))),
            "D": jnp.ones((1, d_inner), jnp.float32),
            "w_out": jax.random.normal(ks[6], (d_inner, d_model)) / math.sqrt(d_inner),
        }
        params["layers"].append(layer)
    return params


def pack_params(params):
    """Merge/fold weights into the kernel layout (bf16 MXU operands)."""
    packed = {
        "embedding": params["embedding"],
        "w_cls": params["w_cls"].astype(MXU_DTYPE),
        "b_cls": params["b_cls"].astype(jnp.float32),
        "layers": [],
    }
    for p in params["layers"]:
        dt_rank = p["w_dt"].shape[0]
        w_in = jnp.concatenate([p["w_in_x"], p["w_in_z"]], axis=1)
        # Fold dt_proj into x_proj: xc @ (Wx[:, :r] @ Wdt) == (xc @ Wx[:, :r]) @ Wdt
        w_dt_full = p["w_x_fused"][:, :dt_rank] @ p["w_dt"]
        w_big = jnp.concatenate([w_dt_full, p["w_x_fused"][:, dt_rank:]], axis=1)
        pad = (-w_big.shape[1]) % 128                 # lane-dense MXU output
        if pad:
            w_big = jnp.pad(w_big, ((0, 0), (0, pad)))
        packed["layers"].append({
            "w_in": w_in.astype(MXU_DTYPE),
            "conv_wT": p["conv_wT"].astype(jnp.float32),
            "conv_b": p["conv_b"].astype(jnp.float32),
            "w_big": w_big.astype(MXU_DTYPE),
            "b_dt": p["b_dt"].astype(jnp.float32),
            "a_logT": p["a_logT"].astype(jnp.float32),
            "D": p["D"].astype(jnp.float32),
            "w_out": p["w_out"].astype(MXU_DTYPE),
        })
    return packed


# ---------------------------------------------------------------------------
# Pure-JAX reference (mirrors the PyTorch Mamba forward semantics).
# ---------------------------------------------------------------------------
def _mamba_layer_ref(x, p):
    d_conv, d_inner = p["conv_wT"].shape
    d_state = p["a_logT"].shape[0]
    dt_rank = p["w_dt"].shape[0]
    L = x.shape[1]
    xpart = x @ p["w_in_x"]
    z = x @ p["w_in_z"]
    xp = jnp.pad(xpart, ((0, 0), (d_conv - 1, 0), (0, 0)))
    acc = sum(xp[:, k:k + L, :] * p["conv_wT"][k][None, None, :]
              for k in range(d_conv))
    xc = _silu(acc + p["conv_b"][0][None, None, :])
    fused = xc @ p["w_x_fused"]
    dt = _softplus(fused[..., :dt_rank] @ p["w_dt"] + p["b_dt"][0])
    bmat = fused[..., dt_rank:dt_rank + d_state]
    cmat = fused[..., dt_rank + d_state:]
    a = -jnp.exp(p["a_logT"]).T                           # (d_inner, d_state)
    bsz = xc.shape[0]

    def step(h, inp):
        dt_t, x_t, b_t, c_t = inp
        da = jnp.exp(dt_t[..., None] * a[None])
        dbx = (dt_t * x_t)[..., None] * b_t[:, None, :]
        h = da * h + dbx
        y = jnp.einsum("bds,bs->bd", h, c_t) + p["D"][0][None, :] * x_t
        return h, y

    h0 = jnp.zeros((bsz, d_inner, d_state), jnp.float32)
    seq = (jnp.moveaxis(dt, 1, 0), jnp.moveaxis(xc, 1, 0),
           jnp.moveaxis(bmat, 1, 0), jnp.moveaxis(cmat, 1, 0))
    _, ys = lax.scan(step, h0, seq)
    y = jnp.moveaxis(ys, 0, 1) * _silu(z)
    return y @ p["w_out"]


def mamba_classifier_ref(params, tokens):
    x = params["embedding"][tokens]
    for layer_p in params["layers"]:
        x = _mamba_layer_ref(x, layer_p)
    return x.mean(axis=1) @ params["w_cls"] + params["b_cls"][0]


if __name__ == "__main__":
    vocab_size, d_model, num_classes = 50, 32, 10
    num_layers, d_state, d_conv, expand = 2, 16, 4, 2
    batch, seq_len = 2, 16

    params = init_params(jax.random.PRNGKey(0), vocab_size, d_model,
                         num_classes, num_layers, d_state, d_conv, expand)
    packed = pack_params(params)
    tokens = jax.random.randint(jax.random.PRNGKey(1), (batch, seq_len),
                                0, vocab_size, dtype=jnp.int32)

    fwd = jax.jit(mamba_classifier_forward, static_argnames=("prescan_rows",))
    # prescan_rows=16 -> 2 M-tiles at these small shapes so the tiled path is
    # exercised; the production default is 512 rows per tile.
    logits = jax.block_until_ready(fwd(packed, tokens, prescan_rows=16))

    ref = mamba_classifier_ref(params, tokens)
    assert logits.shape == (batch, num_classes)
    assert bool(jnp.all(jnp.isfinite(logits)))
    assert bool(jnp.allclose(logits, ref, rtol=2e-2, atol=2e-2)), (
        float(jnp.max(jnp.abs(logits - ref))))
    print("KERNEL_OK")
</pallas_src>

<mosaic_0001>
module attributes {stable_mosaic.version = 11 : i64} {
  func.func @kernel(%arg0: i32, %arg1: memref<2x16x32xf32, #tpu.memory_space<vmem>>, %arg2: memref<32x10xbf16, #tpu.memory_space<vmem>>, %arg3: memref<1x10xf32, #tpu.memory_space<vmem>>, %arg4: memref<2x10xf32, #tpu.memory_space<vmem>>, %arg5: memref<2x32xf32, #tpu.memory_space<vmem>>) attributes {dimension_semantics = [#tpu.dimension_semantics<arbitrary>], iteration_bounds = array<i64: 1>, scalar_prefetch = 0 : i64, scratch_operands = 1 : i64, tpu.core_type = #tpu.core_type<tc>, window_params = [{transform_indices = @transform_0, window_bounds = array<i64: 2, 16, 32>}, {pipeline_mode = #tpu.pipeline_mode<synchronous>, transform_indices = @transform_1, window_bounds = array<i64: 32, 10>}, {pipeline_mode = #tpu.pipeline_mode<synchronous>, transform_indices = @transform_2, window_bounds = array<i64: 1, 10>}, {pipeline_mode = #tpu.pipeline_mode<synchronous>, transform_indices = @transform_3, window_bounds = array<i64: 2, 10>}]} {
    %c0_i32 = arith.constant 0 : i32
    %0 = arith.cmpi eq, %arg0, %c0_i32 : i32
    %1 = arith.extui %0 : i1 to i32
    %c0_i32_0 = arith.constant 0 : i32
    %2 = arith.cmpi ne, %1, %c0_i32_0 : i32
    scf.if %2 {
      %cst_9 = arith.constant 0.000000e+00 : f32
      %11 = vector.broadcast %cst_9 : f32 to vector<2x32xf32>
      %c0_10 = arith.constant 0 : index
      %c0_11 = arith.constant 0 : index
      %12 = vector.load %arg5[%c0_10, %c0_11] : memref<2x32xf32, #tpu.memory_space<vmem>>, vector<2x32xf32>
      tpu.vector_store %arg5[%c0_10, %c0_11], %11 {strides = array<i32>} : memref<2x32xf32, #tpu.memory_space<vmem>>, vector<2x32xf32>,
    } else {
    }
    %c0 = arith.constant 0 : index
    %c0_1 = arith.constant 0 : index
    %3 = vector.load %arg5[%c0, %c0_1] : memref<2x32xf32, #tpu.memory_space<vmem>>, vector<2x32xf32>
    %c0_2 = arith.constant 0 : index
    %c0_3 = arith.constant 0 : index
    %c0_4 = arith.constant 0 : index
    %4 = vector.load %arg1[%c0_2, %c0_3, %c0_4] : memref<2x16x32xf32, #tpu.memory_space<vmem>>, vector<2x16x32xf32>
    %cst = arith.constant dense<0.000000e+00> : vector<2x32xf32>
    %5 = vector.multi_reduction <add>, %4, %cst [1] : vector<2x16x32xf32> to vector<2x32xf32>
    %6 = arith.addf %3, %5 : vector<2x32xf32>
    %c0_5 = arith.constant 0 : index
    %c0_6 = arith.constant 0 : index
    %7 = vector.load %arg5[%c0_5, %c0_6] : memref<2x32xf32, #tpu.memory_space<vmem>>, vector<2x32xf32>
    tpu.vector_store %arg5[%c0_5, %c0_6], %6 {strides = array<i32>} : memref<2x32xf32, #tpu.memory_space<vmem>>, vector<2x32xf32>,
    %c0_i32_7 = arith.constant 0 : i32
    %8 = arith.cmpi eq, %arg0, %c0_i32_7 : i32
    %9 = arith.extui %8 : i1 to i32
    %c0_i32_8 = arith.constant 0 : i32
    %10 = arith.cmpi ne, %9, %c0_i32_8 : i32
    scf.if %10 {
      %c0_9 = arith.constant 0 : index
      %c0_10 = arith.constant 0 : index
      %11 = vector.load %arg5[%c0_9, %c0_10] : memref<2x32xf32, #tpu.memory_space<vmem>>, vector<2x32xf32>
      %cst_11 = arith.constant 6.250000e-02 : f32
      %12 = vector.broadcast %cst_11 : f32 to vector<2x32xf32>
      %13 = arith.mulf %11, %12 : vector<2x32xf32>
      %14 = arith.truncf %13 : vector<2x32xf32> to vector<2x32xbf16>
      %c0_12 = arith.constant 0 : index
      %c0_13 = arith.constant 0 : index
      %15 = vector.load %arg2[%c0_12, %c0_13] : memref<32x10xbf16, #tpu.memory_space<vmem>>, vector<32x10xbf16>
      %cst_14 = arith.constant dense<0.000000e+00> : vector<2x10xf32>
      %16 = tpu.matmul %14, %15, %cst_14 {dimension_numbers = #tpu.dot_dimension_numbers<[1], [0], [0], [1], [0, 0, 1, 1], [], []>} : vector<2x32xbf16>, vector<32x10xbf16>, vector<2x10xf32> -> vector<2x10xf32>
      %c0_15 = arith.constant 0 : index
      %c0_16 = arith.constant 0 : index
      %17 = vector.load %arg3[%c0_15, %c0_16] : memref<1x10xf32, #tpu.memory_space<vmem>>, vector<1x10xf32>
      %18 = vector.broadcast %17 : vector<1x10xf32> to vector<2x10xf32>
      %19 = arith.addf %16, %18 : vector<2x10xf32>
      %c0_17 = arith.constant 0 : index
      %c0_18 = arith.constant 0 : index
      %20 = vector.load %arg4[%c0_17, %c0_18] : memref<2x10xf32, #tpu.memory_space<vmem>>, vector<2x10xf32>
      tpu.vector_store %arg4[%c0_17, %c0_18], %19 {strides = array<i32>} : memref<2x10xf32, #tpu.memory_space<vmem>>, vector<2x10xf32>,
    } else {
    }
    return
  }
  func.func @transform_0(%arg0: i32) -> (i32, i32, i32) {
    %c0_i32 = arith.constant 0 : i32
    %c0_i32_0 = arith.constant 0 : i32
    %c0_i32_1 = arith.constant 0 : i32
    return %c0_i32, %arg0, %c0_i32_0 : i32, i32, i32
  }
  func.func @transform_1(%arg0: i32) -> (i32, i32) {
    %c0_i32 = arith.constant 0 : i32
    %c0_i32_0 = arith.constant 0 : i32
    %c0_i32_1 = arith.constant 0 : i32
    return %c0_i32, %c0_i32_0 : i32, i32
  }
  func.func @transform_2(%arg0: i32) -> (i32, i32) {
    %c0_i32 = arith.constant 0 : i32
    %c0_i32_0 = arith.constant 0 : i32
    %c0_i32_1 = arith.constant 0 : i32
    return %c0_i32, %c0_i32_0 : i32, i32
  }
  func.func @transform_3(%arg0: i32) -> (i32, i32) {
    %c0_i32 = arith.constant 0 : i32
    %c0_i32_0 = arith.constant 0 : i32
    %c0_i32_1 = arith.constant 0 : i32
    return %c0_i32, %c0_i32_0 : i32, i32
  }
}

module attributes {stable_mosaic.version = 11 : i64} {
  func.func @_prescan_kernel(%arg0: i32, %arg1: memref<16x32xf32, #tpu.memory_space<vmem>>, %arg2: memref<16x1xi32, #tpu.memory_space<vmem>>, %arg3: memref<32x128xbf16, #tpu.memory_space<vmem>>, %arg4: memref<4x64xf32, #tpu.memory_space<vmem>>, %arg5: memref<1x64xf32, #tpu.memory_space<vmem>>, %arg6: memref<64x128xbf16, #tpu.memory_space<vmem>>, %arg7: memref<1x64xf32, #tpu.memory_space<vmem>>, %arg8: memref<16x64xf32, #tpu.memory_space<vmem>>, %arg9: memref<16x64xf32, #tpu.memory_space<vmem>>, %arg10: memref<16x64xf32, #tpu.memory_space<vmem>>, %arg11: memref<16x32xf32, #tpu.memory_space<vmem>>) attributes {dimension_semantics = [#tpu.dimension_semantics<parallel>], iteration_bounds = array<i64: 2>, scalar_prefetch = 0 : i64, scratch_operands = 0 : i64, tpu.core_type = #tpu.core_type<tc>, window_params = [{transform_indices = @transform_0, window_bounds = array<i64: 16, 32>}, {transform_indices = @transform_1, window_bounds = array<i64: 16, 1>}, {pipeline_mode = #tpu.pipeline_mode<synchronous>, transform_indices = @transform_2, window_bounds = array<i64: 32, 128>}, {pipeline_mode = #tpu.pipeline_mode<synchronous>, transform_indices = @transform_3, window_bounds = array<i64: 4, 64>}, {pipeline_mode = #tpu.pipeline_mode<synchronous>, transform_indices = @transform_4, window_bounds = array<i64: 1, 64>}, {pipeline_mode = #tpu.pipeline_mode<synchronous>, transform_indices = @transform_5, window_bounds = array<i64: 64, 128>}, {pipeline_mode = #tpu.pipeline_mode<synchronous>, transform_indices = @transform_6, window_bounds = array<i64: 1, 64>}, {transform_indices = @transform_7, window_bounds = array<i64: 16, 64>}, {transform_indices = @transform_8, window_bounds = array<i64: 16, 64>}, {transform_indices = @transform_9, window_bounds = array<i64: 16, 64>}, {transform_indices = @transform_10, window_bounds = array<i64: 16, 32>}]} {
    %c0 = arith.constant 0 : index
    %c0_0 = arith.constant 0 : index
    %0 = vector.load %arg1[%c0, %c0_0] : memref<16x32xf32, #tpu.memory_space<vmem>>, vector<16x32xf32>
    %1 = arith.truncf %0 : vector<16x32xf32> to vector<16x32xbf16>
    %c0_1 = arith.constant 0 : index
    %c0_2 = arith.constant 0 : index
    %2 = vector.load %arg3[%c0_1, %c0_2] : memref<32x128xbf16, #tpu.memory_space<vmem>>, vector<32x128xbf16>
    %cst = arith.constant dense<0.000000e+00> : vector<16x128xf32>
    %3 = tpu.matmul %1, %2, %cst {dimension_numbers = #tpu.dot_dimension_numbers<[1], [0], [0], [1], [0, 0, 1, 1], [], []>} : vector<16x32xbf16>, vector<32x128xbf16>, vector<16x128xf32> -> vector<16x128xf32>
    %4 = vector.extract_strided_slice %3 {offsets = [0, 0], sizes = [16, 64], strides = [1, 1]} : vector<16x128xf32> to vector<16x64xf32>
    %5 = vector.extract_strided_slice %3 {offsets = [0, 64], sizes = [16, 64], strides = [1, 1]} : vector<16x128xf32> to vector<16x64xf32>
    %c0_3 = arith.constant 0 : index
    %c0_4 = arith.constant 0 : index
    %6 = vector.load %arg9[%c0_3, %c0_4] : memref<16x64xf32, #tpu.memory_space<vmem>>, vector<16x64xf32>
    tpu.vector_store %arg9[%c0_3, %c0_4], %5 {strides = array<i32>} : memref<16x64xf32, #tpu.memory_space<vmem>>, vector<16x64xf32>,
    %c0_5 = arith.constant 0 : index
    %c0_6 = arith.constant 0 : index
    %7 = vector.load %arg4[%c0_5, %c0_6] : memref<4x64xf32, #tpu.memory_space<vmem>>, vector<4x64xf32>
    %c0_7 = arith.constant 0 : index
    %c0_8 = arith.constant 0 : index
    %8 = vector.load %arg2[%c0_7, %c0_8] : memref<16x1xi32, #tpu.memory_space<vmem>>, vector<16x1xi32>
    %9 = vector.extract_strided_slice %7 {offsets = [3, 0], sizes = [1, 64], strides = [1, 1]} : vector<4x64xf32> to vector<1x64xf32>
    %10 = vector.broadcast %9 : vector<1x64xf32> to vector<16x64xf32>
    %11 = arith.mulf %4, %10 : vector<16x64xf32>
    %c3_i32 = arith.constant 3 : i32
    %12 = tpu.dynamic_rotate %4 by %c3_i32 dim 0 : vector<16x64xf32>, i32 -> vector<16x64xf32>
    %c3_i32_9 = arith.constant 3 : i32
    %13 = vector.broadcast %c3_i32_9 : i32 to vector<16x1xi32>
    %14 = arith.cmpi sge, %8, %13 : vector<16x1xi32>
    %cst_10 = arith.constant 0.000000e+00 : f32
    %15 = vector.shape_cast %14 : vector<16x1xi1> to vector<16x1xi1>
    %16 = vector.broadcast %15 : vector<16x1xi1> to vector<16x64xi1>
    %17 = vector.broadcast %cst_10 : f32 to vector<16x64xf32>
    %18 = arith.select %16, %12, %17 : vector<16x64xi1>, vector<16x64xf32>
    %19 = vector.extract_strided_slice %7 {offsets = [0, 0], sizes = [1, 64], strides = [1, 1]} : vector<4x64xf32> to vector<1x64xf32>
    %20 = vector.broadcast %19 : vector<1x64xf32> to vector<16x64xf32>
    %21 = arith.mulf %18, %20 : vector<16x64xf32>
    %22 = arith.addf %11, %21 : vector<16x64xf32>
    %c2_i32 = arith.constant 2 : i32
    %23 = tpu.dynamic_rotate %4 by %c2_i32 dim 0 : vector<16x64xf32>, i32 -> vector<16x64xf32>
    %c2_i32_11 = arith.constant 2 : i32
    %24 = vector.broadcast %c2_i32_11 : i32 to vector<16x1xi32>
    %25 = arith.cmpi sge, %8, %24 : vector<16x1xi32>
    %cst_12 = arith.constant 0.000000e+00 : f32
    %26 = vector.shape_cast %25 : vector<16x1xi1> to vector<16x1xi1>
    %27 = vector.broadcast %26 : vector<16x1xi1> to vector<16x64xi1>
    %28 = vector.broadcast %cst_12 : f32 to vector<16x64xf32>
    %29 = arith.select %27, %23, %28 : vector<16x64xi1>, vector<16x64xf32>
    %30 = vector.extract_strided_slice %7 {offsets = [1, 0], sizes = [1, 64], strides = [1, 1]} : vector<4x64xf32> to vector<1x64xf32>
    %31 = vector.broadcast %30 : vector<1x64xf32> to vector<16x64xf32>
    %32 = arith.mulf %29, %31 : vector<16x64xf32>
    %33 = arith.addf %22, %32 : vector<16x64xf32>
    %c1_i32 = arith.constant 1 : i32
    %34 = tpu.dynamic_rotate %4 by %c1_i32 dim 0 : vector<16x64xf32>, i32 -> vector<16x64xf32>
    %c1_i32_13 = arith.constant 1 : i32
    %35 = vector.broadcast %c1_i32_13 : i32 to vector<16x1xi32>
    %36 = arith.cmpi sge, %8, %35 : vector<16x1xi32>
    %cst_14 = arith.constant 0.000000e+00 : f32
    %37 = vector.shape_cast %36 : vector<16x1xi1> to vector<16x1xi1>
    %38 = vector.broadcast %37 : vector<16x1xi1> to vector<16x64xi1>
    %39 = vector.broadcast %cst_14 : f32 to vector<16x64xf32>
    %40 = arith.select %38, %34, %39 : vector<16x64xi1>, vector<16x64xf32>
    %41 = vector.extract_strided_slice %7 {offsets = [2, 0], sizes = [1, 64], strides = [1, 1]} : vector<4x64xf32> to vector<1x64xf32>
    %42 = vector.broadcast %41 : vector<1x64xf32> to vector<16x64xf32>
    %43 = arith.mulf %40, %42 : vector<16x64xf32>
    %44 = arith.addf %33, %43 : vector<16x64xf32>
    %c0_15 = arith.constant 0 : index
    %c0_16 = arith.constant 0 : index
    %45 = vector.load %arg5[%c0_15, %c0_16] : memref<1x64xf32, #tpu.memory_space<vmem>>, vector<1x64xf32>
    %46 = vector.broadcast %45 : vector<1x64xf32> to vector<16x64xf32>
    %47 = arith.addf %44, %46 : vector<16x64xf32>
    %cst_17 = arith.constant 0.000000e+00 : f32
    %48 = vector.broadcast %cst_17 : f32 to vector<16x64xf32>
    %49 = arith.subf %48, %47 : vector<16x64xf32>
    %50 = math.exp %49 : vector<16x64xf32>
    %cst_18 = arith.constant 1.000000e+00 : f32
    %51 = vector.broadcast %cst_18 : f32 to vector<16x64xf32>
    %52 = arith.addf %51, %50 : vector<16x64xf32>
    %cst_19 = arith.constant 1.000000e+00 : f32
    %53 = vector.broadcast %cst_19 : f32 to vector<16x64xf32>
    %54 = arith.divf %53, %52 : vector<16x64xf32>
    %55 = arith.mulf %47, %54 : vector<16x64xf32>
    %c0_20 = arith.constant 0 : index
    %c0_21 = arith.constant 0 : index
    %56 = vector.load %arg8[%c0_20, %c0_21] : memref<16x64xf32, #tpu.memory_space<vmem>>, vector<16x64xf32>
    tpu.vector_store %arg8[%c0_20, %c0_21], %55 {strides = array<i32>} : memref<16x64xf32, #tpu.memory_space<vmem>>, vector<16x64xf32>,
    %57 = arith.truncf %55 : vector<16x64xf32> to vector<16x64xbf16>
    %c0_22 = arith.constant 0 : index
    %c0_23 = arith.constant 0 : index
    %58 = vector.load %arg6[%c0_22, %c0_23] : memref<64x128xbf16, #tpu.memory_space<vmem>>, vector<64x128xbf16>
    %cst_24 = arith.constant dense<0.000000e+00> : vector<16x128xf32>
    %59 = tpu.matmul %57, %58, %cst_24 {dimension_numbers = #tpu.dot_dimension_numbers<[1], [0], [0], [1], [0, 0, 1, 1], [], []>} : vector<16x64xbf16>, vector<64x128xbf16>, vector<16x128xf32> -> vector<16x128xf32>
    %60 = vector.extract_strided_slice %59 {offsets = [0, 0], sizes = [16, 64], strides = [1, 1]} : vector<16x128xf32> to vector<16x64xf32>
    %c0_25 = arith.constant 0 : index
    %c0_26 = arith.constant 0 : index
    %61 = vector.load %arg7[%c0_25, %c0_26] : memref<1x64xf32, #tpu.memory_space<vmem>>, vector<1x64xf32>
    %62 = vector.broadcast %61 : vector<1x64xf32> to vector<16x64xf32>
    %63 = arith.addf %60, %62 : vector<16x64xf32>
    %cst_27 = arith.constant 2.000000e+01 : f32
    %64 = vector.broadcast %cst_27 : f32 to vector<16x64xf32>
    %65 = arith.cmpf ogt, %63, %64 : vector<16x64xf32>
    %cst_28 = arith.constant 2.000000e+01 : f32
    %66 = vector.broadcast %cst_28 : f32 to vector<16x64xf32>
    %67 = arith.minimumf %63, %66 : vector<16x64xf32>
    %68 = math.exp %67 : vector<16x64xf32>
    %cst_29 = arith.constant 1.000000e+00 : f32
    %69 = vector.broadcast %cst_29 : f32 to vector<16x64xf32>
    %70 = arith.addf %69, %68 : vector<16x64xf32>
    %71 = math.log %70 : vector<16x64xf32>
    %72 = arith.select %65, %63, %71 : vector<16x64xi1>, vector<16x64xf32>
    %c0_30 = arith.constant 0 : index
    %c0_31 = arith.constant 0 : index
    %73 = vector.load %arg10[%c0_30, %c0_31] : memref<16x64xf32, #tpu.memory_space<vmem>>, vector<16x64xf32>
    tpu.vector_store %arg10[%c0_30, %c0_31], %72 {strides = array<i32>} : memref<16x64xf32, #tpu.memory_space<vmem>>, vector<16x64xf32>,
    %74 = vector.extract_strided_slice %59 {offsets = [0, 64], sizes = [16, 32], strides = [1, 1]} : vector<16x128xf32> to vector<16x32xf32>
    %c0_32 = arith.constant 0 : index
    %c0_33 = arith.constant 0 : index
    %75 = vector.load %arg11[%c0_32, %c0_33] : memref<16x32xf32, #tpu.memory_space<vmem>>, vector<16x32xf32>
    tpu.vector_store %arg11[%c0_32, %c0_33], %74 {strides = array<i32>} : memref<16x32xf32, #tpu.memory_space<vmem>>, vector<16x32xf32>,
    return
  }
  func.func @transform_0(%arg0: i32) -> (i32, i32) {
    %c0_i32 = arith.constant 0 : i32
    %c0_i32_0 = arith.constant 0 : i32
    return %arg0, %c0_i32 : i32, i32
  }
  func.func @transform_1(%arg0: i32) -> (i32, i32) {
    %c0_i32 = arith.constant 0 : i32
    %c0_i32_0 = arith.constant 0 : i32
    return %arg0, %c0_i32 : i32, i32
  }
  func.func @transform_2(%arg0: i32) -> (i32, i32) {
    %c0_i32 = arith.constant 0 : i32
    %c0_i32_0 = arith.constant 0 : i32
    %c0_i32_1 = arith.constant 0 : i32
    return %c0_i32, %c0_i32_0 : i32, i32
  }
  func.func @transform_3(%arg0: i32) -> (i32, i32) {
    %c0_i32 = arith.constant 0 : i32
    %c0_i32_0 = arith.constant 0 : i32
    %c0_i32_1 = arith.constant 0 : i32
    return %c0_i32, %c0_i32_0 : i32, i32
  }
  func.func @transform_4(%arg0: i32) -> (i32, i32) {
    %c0_i32 = arith.constant 0 : i32
    %c0_i32_0 = arith.constant 0 : i32
    %c0_i32_1 = arith.constant 0 : i32
    return %c0_i32, %c0_i32_0 : i32, i32
  }
  func.func @transform_5(%arg0: i32) -> (i32, i32) {
    %c0_i32 = arith.constant 0 : i32
    %c0_i32_0 = arith.constant 0 : i32
    %c0_i32_1 = arith.constant 0 : i32
    return %c0_i32, %c0_i32_0 : i32, i32
  }
  func.func @transform_6(%arg0: i32) -> (i32, i32) {
    %c0_i32 = arith.constant 0 : i32
    %c0_i32_0 = arith.constant 0 : i32
    %c0_i32_1 = arith.constant 0 : i32
    return %c0_i32, %c0_i32_0 : i32, i32
  }
  func.func @transform_7(%arg0: i32) -> (i32, i32) {
    %c0_i32 = arith.constant 0 : i32
    %c0_i32_0 = arith.constant 0 : i32
    return %arg0, %c0_i32 : i32, i32
  }
  func.func @transform_8(%arg0: i32) -> (i32, i32) {
    %c0_i32 = arith.constant 0 : i32
    %c0_i32_0 = arith.constant 0 : i32
    return %arg0, %c0_i32 : i32, i32
  }
  func.func @transform_9(%arg0: i32) -> (i32, i32) {
    %c0_i32 = arith.constant 0 : i32
    %c0_i32_0 = arith.constant 0 : i32
    return %arg0, %c0_i32 : i32, i32
  }
  func.func @transform_10(%arg0: i32) -> (i32, i32) {
    %c0_i32 = arith.constant 0 : i32
    %c0_i32_0 = arith.constant 0 : i32
    return %arg0, %c0_i32 : i32, i32
  }
}

module attributes {stable_mosaic.version = 11 : i64} {
  func.func @_scan_gate_out_kernel(%arg0: i32, %arg1: memref<1x16x64xf32, #tpu.memory_space<vmem>>, %arg2: memref<1x16x64xf32, #tpu.memory_space<vmem>>, %arg3: memref<1x16x32xf32, #tpu.memory_space<vmem>>, %arg4: memref<1x16x64xf32, #tpu.memory_space<vmem>>, %arg5: memref<16x64xf32, #tpu.memory_space<vmem>>, %arg6: memref<1x64xf32, #tpu.memory_space<vmem>>, %arg7: memref<64x32xbf16, #tpu.memory_space<vmem>>, %arg8: memref<1x16x32xf32, #tpu.memory_space<vmem>>, %arg9: memref<16x64xf32, #tpu.memory_space<vmem>>) attributes {dimension_semantics = [#tpu.dimension_semantics<parallel>], iteration_bounds = array<i64: 2>, scalar_prefetch = 0 : i64, scratch_operands = 1 : i64, tpu.core_type = #tpu.core_type<tc>, window_params = [{transform_indices = @transform_0, window_bounds = array<i64: 1, 16, 64>}, {transform_indices = @transform_1, window_bounds = array<i64: 1, 16, 64>}, {transform_indices = @transform_2, window_bounds = array<i64: 1, 16, 32>}, {transform_indices = @transform_3, window_bounds = array<i64: 1, 16, 64>}, {pipeline_mode = #tpu.pipeline_mode<synchronous>, transform_indices = @transform_4, window_bounds = array<i64: 16, 64>}, {pipeline_mode = #tpu.pipeline_mode<synchronous>, transform_indices = @transform_5, window_bounds = array<i64: 1, 64>}, {pipeline_mode = #tpu.pipeline_mode<synchronous>, transform_indices = @transform_6, window_bounds = array<i64: 64, 32>}, {transform_indices = @transform_7, window_bounds = array<i64: 1, 16, 32>}]} {
    %c0 = arith.constant 0 : index
    %c0_0 = arith.constant 0 : index
    %0 = vector.load %arg5[%c0, %c0_0] : memref<16x64xf32, #tpu.memory_space<vmem>>, vector<16x64xf32>
    %1 = math.exp %0 : vector<16x64xf32>
    %cst = arith.constant 0.000000e+00 : f32
    %2 = vector.broadcast %cst : f32 to vector<16x64xf32>
    %3 = arith.subf %2, %1 : vector<16x64xf32>
    %c0_1 = arith.constant 0 : index
    %c0_2 = arith.constant 0 : index
    %4 = vector.load %arg6[%c0_1, %c0_2] : memref<1x64xf32, #tpu.memory_space<vmem>>, vector<1x64xf32>
    %cst_3 = arith.constant 0.000000e+00 : f32
    %5 = vector.broadcast %cst_3 : f32 to vector<16x64xf32>
    %c0_i32 = arith.constant 0 : i32
    %c2_i32 = arith.constant 2 : i32
    %6 = arith.addi %c0_i32, %c2_i32 : i32
    %c1_i32 = arith.constant 1 : i32
    %7 = scf.for %arg10 = %c0_i32 to %6 step %c1_i32 iter_args(%arg11 = %5) -> (vector<16x64xf32>)  : i32 {
      %c8_i32 = arith.constant 8 : i32
      %26 = arith.muli %arg10, %c8_i32 : i32
      %27 = tpu.assume_multiple %26, 8 : i32
      %c0_19 = arith.constant 0 : index
      %28 = arith.index_cast %27 : i32 to index
      %c0_20 = arith.constant 0 : index
      %29 = vector.load %arg2[%c0_19, %28, %c0_20] : memref<1x16x64xf32, #tpu.memory_space<vmem>>, vector<1x8x64xf32>
      %30 = vector.shape_cast %29 : vector<1x8x64xf32> to vector<8x64xf32>
      %c0_21 = arith.constant 0 : index
      %31 = arith.index_cast %27 : i32 to index
      %c0_22 = arith.constant 0 : index
      %32 = vector.load %arg1[%c0_21, %31, %c0_22] : memref<1x16x64xf32, #tpu.memory_space<vmem>>, vector<1x8x64xf32>
      %33 = vector.shape_cast %32 : vector<1x8x64xf32> to vector<8x64xf32>
      %c0_23 = arith.constant 0 : index
      %34 = arith.index_cast %27 : i32 to index
      %c0_24 = arith.constant 0 : index
      %35 = vector.load %arg3[%c0_23, %34, %c0_24] : memref<1x16x32xf32, #tpu.memory_space<vmem>>, vector<1x8x32xf32>
      %36 = vector.shape_cast %35 : vector<1x8x32xf32> to vector<8x32xf32>
      %37 = arith.mulf %30, %33 : vector<8x64xf32>
      %38 = vector.shape_cast %30 : vector<8x64xf32> to vector<8x1x64xf32>
      %39 = vector.shape_cast %3 : vector<16x64xf32> to vector<1x16x64xf32>
      %40 = vector.broadcast %38 : vector<8x1x64xf32> to vector<8x16x64xf32>
      %41 = vector.broadcast %39 : vector<1x16x64xf32> to vector<8x16x64xf32>
      %42 = arith.mulf %40, %41 : vector<8x16x64xf32>
      %43 = math.exp %42 : vector<8x16x64xf32>
      %44 = vector.extract_strided_slice %36 {offsets = [0, 0], sizes = [8, 16], strides = [1, 1]} : vector<8x32xf32> to vector<8x16xf32>
      %45 = tpu.transpose %44, [1, 0] : vector<8x16xf32> -> vector<16x8xf32>
      %46 = vector.extract_strided_slice %36 {offsets = [0, 16], sizes = [8, 16], strides = [1, 1]} : vector<8x32xf32> to vector<8x16xf32>
      %47 = tpu.transpose %46, [1, 0] : vector<8x16xf32> -> vector<16x8xf32>
      %48 = vector.extract_strided_slice %43 {offsets = [0, 0, 0], sizes = [1, 16, 64], strides = [1, 1, 1]} : vector<8x16x64xf32> to vector<1x16x64xf32>
      %49 = vector.shape_cast %48 : vector<1x16x64xf32> to vector<16x64xf32>
      %50 = arith.mulf %49, %arg11 : vector<16x64xf32>
      %51 = vector.extract_strided_slice %45 {offsets = [0, 0], sizes = [16, 1], strides = [1, 1]} : vector<16x8xf32> to vector<16x1xf32>
      %52 = vector.extract_strided_slice %37 {offsets = [0, 0], sizes = [1, 64], strides = [1, 1]} : vector<8x64xf32> to vector<1x64xf32>
      %53 = vector.broadcast %51 : vector<16x1xf32> to vector<16x64xf32>
      %54 = vector.broadcast %52 : vector<1x64xf32> to vector<16x64xf32>
      %55 = arith.mulf %53, %54 : vector<16x64xf32>
      %56 = arith.addf %50, %55 : vector<16x64xf32>
      %57 = vector.extract_strided_slice %47 {offsets = [0, 0], sizes = [16, 1], strides = [1, 1]} : vector<16x8xf32> to vector<16x1xf32>
      %58 = vector.broadcast %57 : vector<16x1xf32> to vector<16x64xf32>
      %59 = arith.mulf %58, %56 : vector<16x64xf32>
      %cst_25 = arith.constant dense<0.000000e+00> : vector<64xf32>
      %60 = vector.multi_reduction <add>, %59, %cst_25 [0] : vector<16x64xf32> to vector<64xf32>
      %61 = vector.shape_cast %60 : vector<64xf32> to vector<1x64xf32>
      %62 = vector.extract_strided_slice %33 {offsets = [0, 0], sizes = [1, 64], strides = [1, 1]} : vector<8x64xf32> to vector<1x64xf32>
      %63 = arith.mulf %4, %62 : vector<1x64xf32>
      %64 = arith.addf %61, %63 : vector<1x64xf32>
      %65 = vector.extract_strided_slice %43 {offsets = [1, 0, 0], sizes = [1, 16, 64], strides = [1, 1, 1]} : vector<8x16x64xf32> to vector<1x16x64xf32>
      %66 = vector.shape_cast %65 : vector<1x16x64xf32> to vector<16x64xf32>
      %67 = arith.mulf %66, %56 : vector<16x64xf32>
      %68 = vector.extract_strided_slice %45 {offsets = [0, 1], sizes = [16, 1], strides = [1, 1]} : vector<16x8xf32> to vector<16x1xf32>
      %69 = vector.extract_strided_slice %37 {offsets = [1, 0], sizes = [1, 64], strides = [1, 1]} : vector<8x64xf32> to vector<1x64xf32>
      %70 = vector.broadcast %68 : vector<16x1xf32> to vector<16x64xf32>
      %71 = vector.broadcast %69 : vector<1x64xf32> to vector<16x64xf32>
      %72 = arith.mulf %70, %71 : vector<16x64xf32>
      %73 = arith.addf %67, %72 : vector<16x64xf32>
      %74 = vector.extract_strided_slice %47 {offsets = [0, 1], sizes = [16, 1], strides = [1, 1]} : vector<16x8xf32> to vector<16x1xf32>
      %75 = vector.broadcast %74 : vector<16x1xf32> to vector<16x64xf32>
      %76 = arith.mulf %75, %73 : vector<16x64xf32>
      %cst_26 = arith.constant dense<0.000000e+00> : vector<64xf32>
      %77 = vector.multi_reduction <add>, %76, %cst_26 [0] : vector<16x64xf32> to vector<64xf32>
      %78 = vector.shape_cast %77 : vector<64xf32> to vector<1x64xf32>
      %79 = vector.extract_strided_slice %33 {offsets = [1, 0], sizes = [1, 64], strides = [1, 1]} : vector<8x64xf32> to vector<1x64xf32>
      %80 = arith.mulf %4, %79 : vector<1x64xf32>
      %81 = arith.addf %78, %80 : vector<1x64xf32>
      %82 = vector.extract_strided_slice %43 {offsets = [2, 0, 0], sizes = [1, 16, 64], strides = [1, 1, 1]} : vector<8x16x64xf32> to vector<1x16x64xf32>
      %83 = vector.shape_cast %82 : vector<1x16x64xf32> to vector<16x64xf32>
      %84 = arith.mulf %83, %73 : vector<16x64xf32>
      %85 = vector.extract_strided_slice %45 {offsets = [0, 2], sizes = [16, 1], strides = [1, 1]} : vector<16x8xf32> to vector<16x1xf32>
      %86 = vector.extract_strided_slice %37 {offsets = [2, 0], sizes = [1, 64], strides = [1, 1]} : vector<8x64xf32> to vector<1x64xf32>
      %87 = vector.broadcast %85 : vector<16x1xf32> to vector<16x64xf32>
      %88 = vector.broadcast %86 : vector<1x64xf32> to vector<16x64xf32>
      %89 = arith.mulf %87, %88 : vector<16x64xf32>
      %90 = arith.addf %84, %89 : vector<16x64xf32>
      %91 = vector.extract_strided_slice %47 {offsets = [0, 2], sizes = [16, 1], strides = [1, 1]} : vector<16x8xf32> to vector<16x1xf32>
      %92 = vector.broadcast %91 : vector<16x1xf32> to vector<16x64xf32>
      %93 = arith.mulf %92, %90 : vector<16x64xf32>
      %cst_27 = arith.constant dense<0.000000e+00> : vector<64xf32>
      %94 = vector.multi_reduction <add>, %93, %cst_27 [0] : vector<16x64xf32> to vector<64xf32>
      %95 = vector.shape_cast %94 : vector<64xf32> to vector<1x64xf32>
      %96 = vector.extract_strided_slice %33 {offsets = [2, 0], sizes = [1, 64], strides = [1, 1]} : vector<8x64xf32> to vector<1x64xf32>
      %97 = arith.mulf %4, %96 : vector<1x64xf32>
      %98 = arith.addf %95, %97 : vector<1x64xf32>
      %99 = vector.extract_strided_slice %43 {offsets = [3, 0, 0], sizes = [1, 16, 64], strides = [1, 1, 1]} : vector<8x16x64xf32> to vector<1x16x64xf32>
      %100 = vector.shape_cast %99 : vector<1x16x64xf32> to vector<16x64xf32>
      %101 = arith.mulf %100, %90 : vector<16x64xf32>
      %102 = vector.extract_strided_slice %45 {offsets = [0, 3], sizes = [16, 1], strides = [1, 1]} : vector<16x8xf32> to vector<16x1xf32>
      %103 = vector.extract_strided_slice %37 {offsets = [3, 0], sizes = [1, 64], strides = [1, 1]} : vector<8x64xf32> to vector<1x64xf32>
      %104 = vector.broadcast %102 : vector<16x1xf32> to vector<16x64xf32>
      %105 = vector.broadcast %103 : vector<1x64xf32> to vector<16x64xf32>
      %106 = arith.mulf %104, %105 : vector<16x64xf32>
      %107 = arith.addf %101, %106 : vector<16x64xf32>
      %108 = vector.extract_strided_slice %47 {offsets = [0, 3], sizes = [16, 1], strides = [1, 1]} : vector<16x8xf32> to vector<16x1xf32>
      %109 = vector.broadcast %108 : vector<16x1xf32> to vector<16x64xf32>
      %110 = arith.mulf %109, %107 : vector<16x64xf32>
      %cst_28 = arith.constant dense<0.000000e+00> : vector<64xf32>
      %111 = vector.multi_reduction <add>, %110, %cst_28 [0] : vector<16x64xf32> to vector<64xf32>
      %112 = vector.shape_cast %111 : vector<64xf32> to vector<1x64xf32>
      %113 = vector.extract_strided_slice %33 {offsets = [3, 0], sizes = [1, 64], strides = [1, 1]} : vector<8x64xf32> to vector<1x64xf32>
      %114 = arith.mulf %4, %113 : vector<1x64xf32>
      %115 = arith.addf %112, %114 : vector<1x64xf32>
      %116 = vector.extract_strided_slice %43 {offsets = [4, 0, 0], sizes = [1, 16, 64], strides = [1, 1, 1]} : vector<8x16x64xf32> to vector<1x16x64xf32>
      %117 = vector.shape_cast %116 : vector<1x16x64xf32> to vector<16x64xf32>
      %118 = arith.mulf %117, %107 : vector<16x64xf32>
      %119 = vector.extract_strided_slice %45 {offsets = [0, 4], sizes = [16, 1], strides = [1, 1]} : vector<16x8xf32> to vector<16x1xf32>
      %120 = vector.extract_strided_slice %37 {offsets = [4, 0], sizes = [1, 64], strides = [1, 1]} : vector<8x64xf32> to vector<1x64xf32>
      %121 = vector.broadcast %119 : vector<16x1xf32> to vector<16x64xf32>
      %122 = vector.broadcast %120 : vector<1x64xf32> to vector<16x64xf32>
      %123 = arith.mulf %121, %122 : vector<16x64xf32>
      %124 = arith.addf %118, %123 : vector<16x64xf32>
      %125 = vector.extract_strided_slice %47 {offsets = [0, 4], sizes = [16, 1], strides = [1, 1]} : vector<16x8xf32> to vector<16x1xf32>
      %126 = vector.broadcast %125 : vector<16x1xf32> to vector<16x64xf32>
      %127 = arith.mulf %126, %124 : vector<16x64xf32>
      %cst_29 = arith.constant dense<0.000000e+00> : vector<64xf32>
      %128 = vector.multi_reduction <add>, %127, %cst_29 [0] : vector<16x64xf32> to vector<64xf32>
      %129 = vector.shape_cast %128 : vector<64xf32> to vector<1x64xf32>
      %130 = vector.extract_strided_slice %33 {offsets = [4, 0], sizes = [1, 64], strides = [1, 1]} : vector<8x64xf32> to vector<1x64xf32>
      %131 = arith.mulf %4, %130 : vector<1x64xf32>
      %132 = arith.addf %129, %131 : vector<1x64xf32>
      %133 = vector.extract_strided_slice %43 {offsets = [5, 0, 0], sizes = [1, 16, 64], strides = [1, 1, 1]} : vector<8x16x64xf32> to vector<1x16x64xf32>
      %134 = vector.shape_cast %133 : vector<1x16x64xf32> to vector<16x64xf32>
      %135 = arith.mulf %134, %124 : vector<16x64xf32>
      %136 = vector.extract_strided_slice %45 {offsets = [0, 5], sizes = [16, 1], strides = [1, 1]} : vector<16x8xf32> to vector<16x1xf32>
      %137 = vector.extract_strided_slice %37 {offsets = [5, 0], sizes = [1, 64], strides = [1, 1]} : vector<8x64xf32> to vector<1x64xf32>
      %138 = vector.broadcast %136 : vector<16x1xf32> to vector<16x64xf32>
      %139 = vector.broadcast %137 : vector<1x64xf32> to vector<16x64xf32>
      %140 = arith.mulf %138, %139 : vector<16x64xf32>
      %141 = arith.addf %135, %140 : vector<16x64xf32>
      %142 = vector.extract_strided_slice %47 {offsets = [0, 5], sizes = [16, 1], strides = [1, 1]} : vector<16x8xf32> to vector<16x1xf32>
      %143 = vector.broadcast %142 : vector<16x1xf32> to vector<16x64xf32>
      %144 = arith.mulf %143, %141 : vector<16x64xf32>
      %cst_30 = arith.constant dense<0.000000e+00> : vector<64xf32>
      %145 = vector.multi_reduction <add>, %144, %cst_30 [0] : vector<16x64xf32> to vector<64xf32>
      %146 = vector.shape_cast %145 : vector<64xf32> to vector<1x64xf32>
      %147 = vector.extract_strided_slice %33 {offsets = [5, 0], sizes = [1, 64], strides = [1, 1]} : vector<8x64xf32> to vector<1x64xf32>
      %148 = arith.mulf %4, %147 : vector<1x64xf32>
      %149 = arith.addf %146, %148 : vector<1x64xf32>
      %150 = vector.extract_strided_slice %43 {offsets = [6, 0, 0], sizes = [1, 16, 64], strides = [1, 1, 1]} : vector<8x16x64xf32> to vector<1x16x64xf32>
      %151 = vector.shape_cast %150 : vector<1x16x64xf32> to vector<16x64xf32>
      %152 = arith.mulf %151, %141 : vector<16x64xf32>
      %153 = vector.extract_strided_slice %45 {offsets = [0, 6], sizes = [16, 1], strides = [1, 1]} : vector<16x8xf32> to vector<16x1xf32>
      %154 = vector.extract_strided_slice %37 {offsets = [6, 0], sizes = [1, 64], strides = [1, 1]} : vector<8x64xf32> to vector<1x64xf32>
      %155 = vector.broadcast %153 : vector<16x1xf32> to vector<16x64xf32>
      %156 = vector.broadcast %154 : vector<1x64xf32> to vector<16x64xf32>
      %157 = arith.mulf %155, %156 : vector<16x64xf32>
      %158 = arith.addf %152, %157 : vector<16x64xf32>
      %159 = vector.extract_strided_slice %47 {offsets = [0, 6], sizes = [16, 1], strides = [1, 1]} : vector<16x8xf32> to vector<16x1xf32>
      %160 = vector.broadcast %159 : vector<16x1xf32> to vector<16x64xf32>
      %161 = arith.mulf %160, %158 : vector<16x64xf32>
      %cst_31 = arith.constant dense<0.000000e+00> : vector<64xf32>
      %162 = vector.multi_reduction <add>, %161, %cst_31 [0] : vector<16x64xf32> to vector<64xf32>
      %163 = vector.shape_cast %162 : vector<64xf32> to vector<1x64xf32>
      %164 = vector.extract_strided_slice %33 {offsets = [6, 0], sizes = [1, 64], strides = [1, 1]} : vector<8x64xf32> to vector<1x64xf32>
      %165 = arith.mulf %4, %164 : vector<1x64xf32>
      %166 = arith.addf %163, %165 : vector<1x64xf32>
      %167 = vector.extract_strided_slice %43 {offsets = [7, 0, 0], sizes = [1, 16, 64], strides = [1, 1, 1]} : vector<8x16x64xf32> to vector<1x16x64xf32>
      %168 = vector.shape_cast %167 : vector<1x16x64xf32> to vector<16x64xf32>
      %169 = arith.mulf %168, %158 : vector<16x64xf32>
      %170 = vector.extract_strided_slice %45 {offsets = [0, 7], sizes = [16, 1], strides = [1, 1]} : vector<16x8xf32> to vector<16x1xf32>
      %171 = vector.extract_strided_slice %37 {offsets = [7, 0], sizes = [1, 64], strides = [1, 1]} : vector<8x64xf32> to vector<1x64xf32>
      %172 = vector.broadcast %170 : vector<16x1xf32> to vector<16x64xf32>
      %173 = vector.broadcast %171 : vector<1x64xf32> to vector<16x64xf32>
      %174 = arith.mulf %172, %173 : vector<16x64xf32>
      %175 = arith.addf %169, %174 : vector<16x64xf32>
      %176 = vector.extract_strided_slice %47 {offsets = [0, 7], sizes = [16, 1], strides = [1, 1]} : vector<16x8xf32> to vector<16x1xf32>
      %177 = vector.broadcast %176 : vector<16x1xf32> to vector<16x64xf32>
      %178 = arith.mulf %177, %175 : vector<16x64xf32>
      %cst_32 = arith.constant dense<0.000000e+00> : vector<64xf32>
      %179 = vector.multi_reduction <add>, %178, %cst_32 [0] : vector<16x64xf32> to vector<64xf32>
      %180 = vector.shape_cast %179 : vector<64xf32> to vector<1x64xf32>
      %181 = vector.extract_strided_slice %33 {offsets = [7, 0], sizes = [1, 64], strides = [1, 1]} : vector<8x64xf32> to vector<1x64xf32>
      %182 = arith.mulf %4, %181 : vector<1x64xf32>
      %183 = arith.addf %180, %182 : vector<1x64xf32>
      %184 = tpu.concatenate %64, %81, %98, %115, %132, %149, %166, %183 in 0 : vector<1x64xf32>, vector<1x64xf32>, vector<1x64xf32>, vector<1x64xf32>, vector<1x64xf32>, vector<1x64xf32>, vector<1x64xf32>, vector<1x64xf32> -> vector<8x64xf32>
      %185 = arith.index_cast %27 : i32 to index
      %c0_33 = arith.constant 0 : index
      %186 = vector.load %arg9[%185, %c0_33] : memref<16x64xf32, #tpu.memory_space<vmem>>, vector<8x64xf32>
      tpu.vector_store %arg9[%185, %c0_33], %184 {strides = array<i32>} : memref<16x64xf32, #tpu.memory_space<vmem>>, vector<8x64xf32>,
      scf.yield %175 : vector<16x64xf32>
    }
    %c2_i32_4 = arith.constant 2 : i32
    %c0_5 = arith.constant 0 : index
    %c0_6 = arith.constant 0 : index
    %8 = vector.load %arg9[%c0_5, %c0_6] : memref<16x64xf32, #tpu.memory_space<vmem>>, vector<16x64xf32>
    %c0_7 = arith.constant 0 : index
    %c0_8 = arith.constant 0 : index
    %c0_9 = arith.constant 0 : index
    %9 = vector.load %arg4[%c0_7, %c0_8, %c0_9] : memref<1x16x64xf32, #tpu.memory_space<vmem>>, vector<1x16x64xf32>
    %10 = vector.shape_cast %9 : vector<1x16x64xf32> to vector<16x64xf32>
    %cst_10 = arith.constant 0.000000e+00 : f32
    %11 = vector.broadcast %cst_10 : f32 to vector<16x64xf32>
    %12 = arith.subf %11, %10 : vector<16x64xf32>
    %13 = math.exp %12 : vector<16x64xf32>
    %cst_11 = arith.constant 1.000000e+00 : f32
    %14 = vector.broadcast %cst_11 : f32 to vector<16x64xf32>
    %15 = arith.addf %14, %13 : vector<16x64xf32>
    %cst_12 = arith.constant 1.000000e+00 : f32
    %16 = vector.broadcast %cst_12 : f32 to vector<16x64xf32>
    %17 = arith.divf %16, %15 : vector<16x64xf32>
    %18 = arith.mulf %10, %17 : vector<16x64xf32>
    %19 = arith.mulf %8, %18 : vector<16x64xf32>
    %20 = arith.truncf %19 : vector<16x64xf32> to vector<16x64xbf16>
    %c0_13 = arith.constant 0 : index
    %c0_14 = arith.constant 0 : index
    %21 = vector.load %arg7[%c0_13, %c0_14] : memref<64x32xbf16, #tpu.memory_space<vmem>>, vector<64x32xbf16>
    %cst_15 = arith.constant dense<0.000000e+00> : vector<16x32xf32>
    %22 = tpu.matmul %20, %21, %cst_15 {dimension_numbers = #tpu.dot_dimension_numbers<[1], [0], [0], [1], [0, 0, 1, 1], [], []>} : vector<16x64xbf16>, vector<64x32xbf16>, vector<16x32xf32> -> vector<16x32xf32>
    %c0_16 = arith.constant 0 : index
    %c0_17 = arith.constant 0 : index
    %c0_18 = arith.constant 0 : index
    %23 = vector.load %arg8[%c0_16, %c0_17, %c0_18] : memref<1x16x32xf32, #tpu.memory_space<vmem>>, vector<1x16x32xf32>
    %24 = vector.shape_cast %23 : vector<1x16x32xf32> to vector<16x32xf32>
    %25 = vector.shape_cast %22 : vector<16x32xf32> to vector<1x16x32xf32>
    tpu.vector_store %arg8[%c0_16, %c0_17, %c0_18], %25 {strides = array<i32>} : memref<1x16x32xf32, #tpu.memory_space<vmem>>, vector<1x16x32xf32>,
    return
  }
  func.func @transform_0(%arg0: i32) -> (i32, i32, i32) {
    %c0_i32 = arith.constant 0 : i32
    %c0_i32_0 = arith.constant 0 : i32
    %c0_i32_1 = arith.constant 0 : i32
    return %arg0, %c0_i32, %c0_i32_0 : i32, i32, i32
  }
  func.func @transform_1(%arg0: i32) -> (i32, i32, i32) {
    %c0_i32 = arith.constant 0 : i32
    %c0_i32_0 = arith.constant 0 : i32
    %c0_i32_1 = arith.constant 0 : i32
    return %arg0, %c0_i32, %c0_i32_0 : i32, i32, i32
  }
  func.func @transform_2(%arg0: i32) -> (i32, i32, i32) {
    %c0_i32 = arith.constant 0 : i32
    %c0_i32_0 = arith.constant 0 : i32
    %c0_i32_1 = arith.constant 0 : i32
    return %arg0, %c0_i32, %c0_i32_0 : i32, i32, i32
  }
  func.func @transform_3(%arg0: i32) -> (i32, i32, i32) {
    %c0_i32 = arith.constant 0 : i32
    %c0_i32_0 = arith.constant 0 : i32
    %c0_i32_1 = arith.constant 0 : i32
    return %arg0, %c0_i32, %c0_i32_0 : i32, i32, i32
  }
  func.func @transform_4(%arg0: i32) -> (i32, i32) {
    %c0_i32 = arith.constant 0 : i32
    %c0_i32_0 = arith.constant 0 : i32
    %c0_i32_1 = arith.constant 0 : i32
    return %c0_i32, %c0_i32_0 : i32, i32
  }
  func.func @transform_5(%arg0: i32) -> (i32, i32) {
    %c0_i32 = arith.constant 0 : i32
    %c0_i32_0 = arith.constant 0 : i32
    %c0_i32_1 = arith.constant 0 : i32
    return %c0_i32, %c0_i32_0 : i32, i32
  }
  func.func @transform_6(%arg0: i32) -> (i32, i32) {
    %c0_i32 = arith.constant 0 : i32
    %c0_i32_0 = arith.constant 0 : i32
    %c0_i32_1 = arith.constant 0 : i32
    return %c0_i32, %c0_i32_0 : i32, i32
  }
  func.func @transform_7(%arg0: i32) -> (i32, i32, i32) {
    %c0_i32 = arith.constant 0 : i32
    %c0_i32_0 = arith.constant 0 : i32
    %c0_i32_1 = arith.constant 0 : i32
    return %arg0, %c0_i32, %c0_i32_0 : i32, i32, i32
  }
}

</mosaic_0001>

<bundles_post_ra>
// kernel: tile.0
= control target key start
LH: loop header
LB: loop body
LE: loop exit
PB: predicated region body
PF: predicated region fallthrough
CT: control target
= control target key end

     0   :  { %s130_s8 = smov 127   ;;  %s131_s9 = smov 123   ;;  %vm7_vm0 = vcmask 7168   ;;  %s221_s0 = inlined_call_operand.vmem [shape: s32[2,16], index: 0, kind: input, shape index: {}]   ;;  %s222_s1 = inlined_call_operand.vmem [shape: s32[32,1], index: 1, kind: output, shape index: {}]  }
   0x1   :  { %v4_v0 = vld [vmem:[%s221_s0] sm:$0x3]  ;;  %s129_s0 = smov 125   ;;  %s132_s10 = smov 124  }
   0x2   :  { %5 = vst [vmem:[#allocation0] sm:$0x3] %v4_v0  ;;  %s133_s11 = smov 126   ;;  %s134_s12 = smov 122  }
   0x3   :  { %s135_s13 = smov 120   ;;  %s136_s14 = smov 121  }
   0x4   :  { %s137_s15 = smov 119   ;;  %s138_s16 = smov 117  }
   0x5   :  { %s139_s17 = smov 118   ;;  %s140_s18 = smov 116  }
   0x6   :  { %s141_s19 = smov 114   ;;  %s142_s20 = smov 115  }
   0x7   :  { %s143_s21 = smov 113  }
   0x9   :  { %v21_v1 = vld [vmem:[#allocation0] sm:$0x3]  }
   0xa   :  { %v9_v2 = vld [vmem:[#allocation0] sm:$0x3]   ;;  %22 = vrot.lane.b32.xlu1 %v21_v1, %s129_s0 }
   0xb   :  { %10 = vrot.lane.b32.xlu0 %v9_v2, %s130_s8  ;;  %v33_v3 = vld [vmem:[#allocation0] sm:$0x3]  }
   0xc   :  { %34 = vrot.lane.b32.xlu2 %v33_v3, %s131_s9  ;;  %v27_v4 = vld [vmem:[#allocation0] sm:$0x3]  }
   0xd   :  { %v15_v5 = vld [vmem:[#allocation0] sm:$0x3]  }
   0xe   :  { %v39_v6 = vld [vmem:[#allocation0] sm:$0x3]  }
   0xf   :  { %v51_v7 = vld [vmem:[#allocation0] sm:$0x3]  }
  0x10   :  { %v45_v8 = vld [vmem:[#allocation0] sm:$0x3]  }
  0x11   :  { %v57_v9 = vld [vmem:[#allocation0] sm:$0x3]  }
  0x12   :  { %28 = vrot.lane.b32.xlu1 %v27_v4, %s132_s10  ;;  %v69_v10 = vld [vmem:[#allocation0] sm:$0x3]  }
  0x13   :  { %16 = vrot.lane.b32.xlu0 %v15_v5, %s133_s11  ;;  %v63_v11 = vld [vmem:[#allocation0] sm:$0x3]  }
  0x14   :  { %40 = vrot.lane.b32.xlu2 %v39_v6, %s134_s12  ;;  %v75_v12 = vld [vmem:[#allocation0] sm:$0x3]  }
  0x15   :  { %v87_v13 = vld [vmem:[#allocation0] sm:$0x3]  }
  0x16   :  { %v81_v14 = vld [vmem:[#allocation0] sm:$0x3]  }
  0x17   :  { %v93_v15 = vld [vmem:[#allocation0] sm:$0x3]  }
  0x18   :  { %v6_v21 = vld [vmem:[#allocation0] sm:$0x3]  }
  0x19   :  { %8 = vst.msk [vmem:[%s222_s1] ss:$16 sm:$0x3] %vm7_vm0, %v6_v21  }
  0x1a   :  { %52 = vrot.lane.b32.xlu1 %v51_v7, %s135_s13 }
  0x1b   :  { %46 = vrot.lane.b32.xlu0 %v45_v8, %s136_s14 }
  0x1c   :  { %58 = vrot.lane.b32.xlu2 %v57_v9, %s137_s15 }
  0x22   :  { %70 = vrot.lane.b32.xlu1 %v69_v10, %s138_s16 }
  0x23   :  { %64 = vrot.lane.b32.xlu0 %v63_v11, %s139_s17 }
  0x24   :  { %76 = vrot.lane.b32.xlu2 %v75_v12, %s140_s18 }
  0x2a   :  { %88 = vrot.lane.b32.xlu1 %v87_v13, %s141_s19 }
  0x2b   :  { %82 = vrot.lane.b32.xlu0 %v81_v14, %s142_s20 }
  0x2c   :  { %94 = vrot.lane.b32.xlu2 %v93_v15, %s143_s21 }
  0x66   :  { %v35_v16 = vpop.permute.xlu2 %34  }
  0x67   :  { %103 = vst.msk [vmem:[%s222_s1 + $0x5] ss:$16 sm:$0x3] %vm7_vm0, %v35_v16  }
  0x6e   :  { %v41_v17 = vpop.permute.xlu2 %40  }
  0x6f   :  { %104 = vst.msk [vmem:[%s222_s1 + $0x6] ss:$16 sm:$0x3] %vm7_vm0, %v41_v17  }
  0x76   :  { %v59_v18 = vpop.permute.xlu2 %58  }
  0x77   :  { %107 = vst.msk [vmem:[%s222_s1 + $0x9] ss:$16 sm:$0x3] %vm7_vm0, %v59_v18  }
  0x7c   :  { %v23_v19 = vpop.permute.xlu1 %22  }
  0x7d   :  { %v11_v20 = vpop.permute.xlu0 %10   ;;  %101 = vst.msk [vmem:[%s222_s1 + $0x3] ss:$16 sm:$0x3] %vm7_vm0, %v23_v19  }
  0x7e   :  { %99 = vst.msk [vmem:[%s222_s1 + $0x1] ss:$16 sm:$0x3] %vm7_vm0, %v11_v20   ;;  %v77_v22 = vpop.permute.xlu2 %76  }
  0x7f   :  { %110 = vst.msk [vmem:[%s222_s1 + $0xc] ss:$16 sm:$0x3] %vm7_vm0, %v77_v22  }
  0x84   :  { %v29_v23 = vpop.permute.xlu1 %28  }
  0x85   :  { %v17_v24 = vpop.permute.xlu0 %16   ;;  %102 = vst.msk [vmem:[%s222_s1 + $0x4] ss:$16 sm:$0x3] %vm7_vm0, %v29_v23  }
  0x86   :  { %100 = vst.msk [vmem:[%s222_s1 + $0x2] ss:$16 sm:$0x3] %vm7_vm0, %v17_v24   ;;  %v95_v25 = vpop.permute.xlu2 %94  }
  0x87   :  { %113 = vst.msk [vmem:[%s222_s1 + $0xf] ss:$16 sm:$0x3] %vm7_vm0, %v95_v25  }
  0x8c   :  { %v53_v26 = vpop.permute.xlu1 %52  }
  0x8d   :  { %v47_v27 = vpop.permute.xlu0 %46   ;;  %106 = vst.msk [vmem:[%s222_s1 + $0x8] ss:$16 sm:$0x3] %vm7_vm0, %v53_v26  }
  0x8e   :  { %105 = vst.msk [vmem:[%s222_s1 + $0x7] ss:$16 sm:$0x3] %vm7_vm0, %v47_v27  }
  0x94   :  { %v71_v28 = vpop.permute.xlu1 %70  }
  0x95   :  { %v65_v29 = vpop.permute.xlu0 %64   ;;  %109 = vst.msk [vmem:[%s222_s1 + $0xb] ss:$16 sm:$0x3] %vm7_vm0, %v71_v28  }
  0x96   :  { %108 = vst.msk [vmem:[%s222_s1 + $0xa] ss:$16 sm:$0x3] %vm7_vm0, %v65_v29  }
  0x9c   :  { %v89_v30 = vpop.permute.xlu1 %88  }
  0x9d   :  { %v83_v31 = vpop.permute.xlu0 %82   ;;  %112 = vst.msk [vmem:[%s222_s1 + $0xe] ss:$16 sm:$0x3] %vm7_vm0, %v89_v30  }
  0x9e   :  { %111 = vst.msk [vmem:[%s222_s1 + $0xd] ss:$16 sm:$0x3] %vm7_vm0, %v83_v31  }

// kernel: mamba_classifier_forward.5
= control target key start
LH: loop header
LB: loop body
LE: loop exit
PB: predicated region body
PF: predicated region fallthrough
CT: control target
= control target key end

     0   :  { %s1003_s13 = smov 0   ;;  %s1091_s0 = inlined_call_operand.vmem [shape: f32[32,32], index: 0, kind: input, shape index: {}]   ;;  %s1092_s1 = inlined_call_operand.vmem [shape: s32[32,1], index: 1, kind: input, shape index: {}]   ;;  %s1093_s2 = inlined_call_operand.vmem [shape: bf16[32,128], index: 2, kind: input, shape index: {}]   ;;  %s1094_s3 = inlined_call_operand.vmem [shape: f32[4,64], index: 3, kind: input, shape index: {}]   ;;  %s1095_s4 = inlined_call_operand.vmem [shape: f32[1,64], index: 4, kind: input, shape index: {}]   ;;  %s1096_s5 = inlined_call_operand.vmem [shape: bf16[64,128], index: 5, kind: input, shape index: {}]   ;;  %s1097_s6 = inlined_call_operand.vmem [shape: f32[1,64], index: 6, kind: input, shape index: {}]   ;;  %s1098_s7 = inlined_call_operand.vmem [shape: f32[32,64], index: 7, kind: output, shape index: {0}]   ;;  %s1099_s8 = inlined_call_operand.vmem [shape: f32[32,64], index: 8, kind: output, shape index: {1}]   ;;  %s1100_s9 = inlined_call_operand.vmem [shape: f32[32,64], index: 9, kind: output, shape index: {2}]   ;;  %s1101_s10 = inlined_call_operand.vmem [shape: f32[32,32], index: 10, kind: output, shape index: {3}]  }
   0x1 LB: > { %s856_s14 = sadd.s32 4294967295, %s944_s13   ;;  %p860_p0 = scmp.ge.s32.totalorder %s944_s13, 1  ;;  %s944_s13 = sphi %s1003_s13, %s21_s13  }
   0x2   : > { %p331_p1 = scmp.lt.s32.totalorder %s944_s13, 3 }
   0x4   : > { %p332_p2 = pnand %p860_p0, %p331_p1 }
   0x5   : > { %s861_s17 = sshll.u32 (!%p332_p2), %s856_s14, 1  ;;  %s947_s16 = smov (!%p332_p2), 64  }
   0x6   : > { %335 = sbr.rel (%p332_p2) target bundleno = 453 (0x1c5), region = 48  ;;  %p390_p3 = scmp.lt.s32.totalorder (!%p332_p2), %s861_s17, 3 }
   0xb   : > { %v902_v0 = vld [vmem:[%s1093_s2 + $0x8] sm:$0xff]  ;;  %v946_v1 = vmov 0   ;;  %v901_v2 = vld [vmem:[%s1093_s2] sm:$0xff]  ;;  %s1103_s17 = smov (!%p390_p3, %s861_s17), 3  ;;  %vm445_vm0 = vcmask 261120   ;;  %v906_v14 = vld [vmem:[%s1096_s5 + $0x18] sm:$0xff]  ;;  %v482_v21 = vlaneseq }
   0xc   : > { %917 = vset.pattern.permute.xlu0 %v946_v1  ;;  %918 = vset.pattern.permute.xlu1 %v946_v1  ;;  %s1017_s20 = sshll.u32 %s1103_s17, 3  ;;  %v905_v15 = vld [vmem:[%s1096_s5 + $0x10] sm:$0xff]  ;;  %v904_v16 = vld [vmem:[%s1096_s5 + $0x8] sm:$0xff]  ;;  %v903_v18 = vld [vmem:[%s1096_s5] sm:$0xff] }
   0xd   : > { %455 = vmatpush.bf16.msra.mxu0 %v902_v0  ;;  %919 = vset.pattern.permute.xlu2 %v946_v1  ;;  %s393_s23 = scalar_lea.vmem %s1091_s0, %s1017_s20  ;;  %s399_s26 = scalar_lea.vmem %s1092_s1, %s1017_s20  ;;  %v474_v24 = vld [vmem:[%s1094_s3] sm:$0xf]  ;;  %v483_v25 = vshrl.u32 %v482_v21, 7 }
   0xe   : > { %v426_v3 = vld [vmem:[%s393_s23] sm:$0xff]  ;;  %v427_v4 = vld [vmem:[%s393_s23 + $0x8] sm:$0xff]  ;;  %642 = vmatpush.bf16.msra.mxu1 %v906_v14  ;;  %v477_v26 = vperm.slane %v474_v24, 3  ;;  %v501_v29 = vperm.slane %v474_v24, 0  ;;  %v525_v31 = vperm.slane %v474_v24, 1  ;;  %v549_v32 = vperm.slane %v474_v24, 2  ;;  %s405_s24 = scalar_lea.vmem %s1098_s7, %s1017_s20  ;;  %s411_s27 = scalar_lea.vmem %s1099_s8, %s1017_s20 }
   0xf   : > { %v475_v5 = vld [vmem:[%s399_s26] sm:$0xff]  ;;  %v428_v6 = vpack.c.bf16 %v427_v4, %v426_v3  ;;  %v476_v9 = vld [vmem:[%s399_s26 + $0x8] sm:$0xff]  ;;  %vm484_vm9 = vcmp.lt.s32.totalorder %v483_v25, 3  ;;  %vm508_vm10 = vcmp.lt.s32.totalorder %v483_v25, 2  ;;  %vm532_vm11 = vcmp.lt.s32.totalorder %v483_v25, 1  ;;  %s417_s12 = scalar_lea.vmem %s1100_s9, %s1017_s20 }
  0x10   : > { %vm487_vm1 = vcmp.ge.s32.totalorder %v475_v5, 3  ;;  %vm511_vm2 = vcmp.ge.s32.totalorder %v475_v5, 2  ;;  %vm535_vm3 = vcmp.ge.s32.totalorder %v475_v5, 1  ;;  %vm488_vm4 = vcmp.ge.s32.totalorder %v476_v9, 3  ;;  %v920_v63 = vld [vmem:[%s1095_s4] ss:$0 sm:$0xff] }
  0x11   : > { %456 = vmatpush.bf16.msra.mxu0 %v901_v2  ;;  %v489_v7 = vsel %vm487_vm1, 1, %v946_v1  ;;  %v513_v8 = vsel %vm511_vm2, 1, %v946_v1  ;;  %v537_v10 = vsel %vm535_vm3, 1, %v946_v1  ;;  %vm512_vm5 = vcmp.ge.s32.totalorder %v476_v9, 2 }
  0x12   : > { %492 = vperm.xlu0 %917, %v489_v7   ;;  %516 = vperm.xlu1 %918, %v513_v8   ;;  %vm536_vm6 = vcmp.ge.s32.totalorder %v476_v9, 1  ;;  %v490_v11 = vsel %vm488_vm4, 1, %v946_v1  ;;  %v514_v12 = vsel %vm512_vm5, 1, %v946_v1 }
  0x13   : > { %540 = vperm.xlu2 %919, %v537_v10   ;;  %v538_v13 = vsel %vm536_vm6, 1, %v946_v1  ;;  %643 = vmatpush.bf16.msra.mxu1 %v905_v15 }
  0x14   : > { %881 = vmatmul.msk.bf16.vlgmr.msra.gmra.mxu0 %vm445_vm0, %v428_v6 }
  0x17   : > { %644 = vmatpush.bf16.msra.mxu1 %v904_v16 }
  0x1a   : > { %495 = vperm.xlu0 %917, %v490_v11   ;;  %519 = vperm.xlu1 %918, %v514_v12  }
  0x1b   : > { %543 = vperm.xlu2 %919, %v538_v13   ;;  %645 = vmatpush.bf16.msra.mxu1 %v903_v18 }
  0x6d   : > { %v541_v17 = vpop.permute.xlu2 %540 }
  0x6e   : > { %vm545_vm7 = vcmp.eq.s32.totalorder %v541_v17, 1 }
  0x75   : > { %v544_v23 = vpop.permute.xlu2 %543 }
  0x76   : > { %vm546_vm8 = vcmp.eq.s32.totalorder %v544_v23, 1 }
  0x84   : > { %v493_v19 = vpop.permute.xlu0 %492  ;;  %v517_v20 = vpop.permute.xlu1 %516 }
  0x85   : > { %vm497_vm12 = vcmp.eq.s32.totalorder %v493_v19, 1  ;;  %vm521_vm13 = vcmp.eq.s32.totalorder %v517_v20, 1 }
  0x8c   : > { %v496_v27 = vpop.permute.xlu0 %495  ;;  %v520_v28 = vpop.permute.xlu1 %519 }
  0x8d   : > { %vm498_vm14 = vcmp.eq.s32.totalorder %v496_v27, 1  ;;  %vm522_vm15 = vcmp.eq.s32.totalorder %v520_v28, 1 }
  0x91   : > { %v458_v22 = vpop.f32.mrf.mxu0 }
  0x92   : > { %465 = vrot.lane.b32.xlu0 %v458_v22, %s947_s16  ;;  %v480_v33 = vrot.slane %v458_v22, 5  ;;  %v506_v34 = vrot.slane %v458_v22, 6  ;;  %v530_v37 = vrot.slane %v458_v22, 7  ;;  %v478_v47 = vmul.f32 %v477_v26, %v458_v22 }
  0x99   : > { %v460_v30 = vpop.f32.mrf.mxu0 }
  0x9a   : > { %v481_v35 = vrot.slane %v460_v30, 5  ;;  %v507_v36 = vrot.slane %v460_v30, 6  ;;  %467 = vrot.lane.b32.xlu2 %v460_v30, %s947_s16  ;;  %v531_v38 = vrot.slane %v460_v30, 7  ;;  %v479_v48 = vmul.f32 %v477_v26, %v460_v30 }
  0x9c   : > { %v485_v39 = vsel %vm484_vm9, %v480_v33, %v481_v35  ;;  %v486_v40 = vsel %vm484_vm9, %v481_v35, %v480_v33  ;;  %v509_v41 = vsel %vm508_vm10, %v506_v34, %v507_v36  ;;  %v510_v42 = vsel %vm508_vm10, %v507_v36, %v506_v34 }
  0x9d   : > { %v499_v43 = vsel %vm497_vm12, %v486_v40, 0.0  ;;  %v500_v44 = vsel %vm498_vm14, %v485_v39, 0.0  ;;  %v523_v45 = vsel %vm521_vm13, %v510_v42, 0.0  ;;  %v524_v46 = vsel %vm522_vm15, %v509_v41, 0.0 }
  0x9e   : > { %v502_v49 = vmul.f32 %v501_v29, %v499_v43  ;;  %v503_v50 = vmul.f32 %v501_v29, %v500_v44  ;;  %v526_v51 = vmul.f32 %v525_v31, %v523_v45  ;;  %v527_v52 = vmul.f32 %v525_v31, %v524_v46 }
  0x9f   : > { %v533_v53 = vsel %vm532_vm11, %v530_v37, %v531_v38  ;;  %v534_v54 = vsel %vm532_vm11, %v531_v38, %v530_v37  ;;  %v921_v37 = vld [vmem:[%s1097_s6] ss:$0 sm:$0xff] }
  0xa0   : > { %v504_v55 = vadd.f32 %v502_v49, %v478_v47  ;;  %v505_v56 = vadd.f32 %v503_v50, %v479_v48  ;;  %v547_v57 = vsel %vm545_vm7, %v534_v54, 0.0  ;;  %v548_v58 = vsel %vm546_vm8, %v533_v53, 0.0 }
  0xa1   : > { %v550_v61 = vmul.f32 %v549_v32, %v547_v57  ;;  %v551_v62 = vmul.f32 %v549_v32, %v548_v58  ;;  %vm471_vm8 = vcmask 523264  }
  0xa2   : > { %v529_v59 = vadd.f32 %v527_v52, %v505_v56  ;;  %v528_v60 = vadd.f32 %v526_v51, %v504_v55 }
  0xa4   : > { %v552_v0 = vadd.f32 %v550_v61, %v528_v60  ;;  %v553_v1 = vadd.f32 %v551_v62, %v529_v59 }
  0xa6   : > { %v558_v2 = vadd.f32 %v920_v63, %v552_v0  ;;  %v559_v3 = vadd.f32 %v920_v63, %v553_v1 }
  0xa8   : > { %v560_v4 = vsub.f32 0.0, %v558_v2  ;;  %v561_v5 = vsub.f32 0.0, %v559_v3 }
  0xaa   : > { %v562_v6 = vmul.f32 1.442695, %v560_v4  ;;  %v564_v7 = vmul.f32 1.442695, %v561_v5 }
  0xac   : > { %922 = vpow2.f32 %v562_v6 }
  0xad   : > { %924 = vpow2.f32 %v564_v7 }
  0xb2   : > { %v923_v8 = vpop.eup %922 }
  0xb3   : > { %v925_v9 = vpop.eup %924  ;;  %v566_v10 = vadd.f32 1.0, %v923_v8 }
  0xb4   : > { %v567_v11 = vadd.f32 1.0, %v925_v9 }
  0xb5   : > { %926 = vrcp.f32 %v566_v10  ;;  %v579_v17 = vand.u32 2147483648, %v566_v10  ;;  %v577_v20 = vand.u32 2147483647, %v566_v10  ;;  %vm573_vm3 = vweird.f32 %v566_v10 }
  0xb6   : > { %928 = vrcp.f32 %v567_v11  ;;  %v594_v21 = vand.u32 2147483648, %v567_v11  ;;  %v592_v23 = vand.u32 2147483647, %v567_v11  ;;  %vm588_vm5 = vweird.f32 %v567_v11 }
  0xb7   : > { %v580_v25 = vor.u32 1.1754944e-38, %v579_v17  ;;  %vm578_vm6 = vcmp.eq.f32.partialorder %v577_v20, 8.507059e+37 }
  0xb8   : > { %v595_v28 = vor.u32 1.1754944e-38, %v594_v21  ;;  %vm593_vm9 = vcmp.eq.f32.partialorder %v592_v23, 8.507059e+37 }
  0xbb   : > { %v927_v12 = vpop.eup %926 }
  0xbc   : > { %v929_v13 = vpop.eup %928  ;;  %v569_v14 = vmul.f32 %v927_v12, %v566_v10  ;;  %vm574_vm1 = vweird.f32 %v927_v12 }
  0xbd   : > { %v584_v15 = vmul.f32 %v929_v13, %v567_v11  ;;  %vm589_vm2 = vweird.f32 %v929_v13  ;;  %vm575_vm4 = vmor %vm573_vm3, %vm574_vm1 }
  0xbe   : > { %v570_v16 = vsub.f32 1.0, %v569_v14  ;;  %vm590_vm7 = vmor %vm588_vm5, %vm589_vm2 }
  0xbf   : > { %v585_v18 = vsub.f32 1.0, %v584_v15 }
  0xc0   : > { %v571_v19 = vmul.f32 %v927_v12, %v570_v16 }
  0xc1   : > { %v586_v22 = vmul.f32 %v929_v13, %v585_v18 }
  0xc2   : > { %v572_v24 = vadd.f32 %v927_v12, %v571_v19 }
  0xc3   : > { %v587_v26 = vadd.f32 %v929_v13, %v586_v22 }
  0xc4   : > { %v576_v27 = vsel %vm575_vm4, %v927_v12, %v572_v24 }
  0xc5   : > { %v581_v29 = vsel %vm578_vm6, %v580_v25, %v576_v27  ;;  %v591_v30 = vsel %vm590_vm7, %v929_v13, %v587_v26 }
  0xc6   : > { %v596_v31 = vsel %vm593_vm9, %v595_v28, %v591_v30  ;;  %v598_v32 = vmul.f32 %v581_v29, %v558_v2 }
  0xc7   : > { %v599_v33 = vmul.f32 %v596_v31, %v559_v3 }
  0xc8   : > { %600 = vst.msk [vmem:[%s405_s24] sm:$0xff] %vm471_vm8, %v598_v32 }
  0xc9   : > { %601 = vst.msk [vmem:[%s405_s24 + $0x8] sm:$0xff] %vm471_vm8, %v599_v33  ;;  %v602_v34 = vpack.c.bf16 %v599_v33, %v598_v32 }
  0xcb   : > { %898 = vmatmul.msk.bf16.vlgmr.msra.gmra.mxu1 %vm471_vm8, %v602_v34 }
  0xf4   : > { %v468_v36 = vpop.permute.xlu2 %467 }
  0xf5   : > { %473 = vst.msk [vmem:[%s411_s27 + $0x8] sm:$0xff] %vm471_vm8, %v468_v36 }
 0x104   : > { %v466_v35 = vpop.permute.xlu0 %465 }
 0x105   : > { %472 = vst.msk [vmem:[%s411_s27] sm:$0xff] %vm471_vm8, %v466_v35 }
 0x148   : > { %v647_v38 = vpop.f32.mrf.mxu1 }
 0x149   : > { %v656_v39 = vadd.f32 %v921_v37, %v647_v38  ;;  %678 = vrot.lane.b32.xlu1 %v647_v38, %s947_s16 }
 0x14b   : > { %v660_v40 = vmin.f32 %v656_v39, 20.0  ;;  %vm658_vm10 = vcmp.gt.f32.partialorder %v656_v39, 20.0 }
 0x14d   : > { %v662_v41 = vmul.f32 1.442695, %v660_v40 }
 0x14f   : > { %930 = vpow2.f32 %v662_v41 }
 0x150   : > { %v649_v42 = vpop.f32.mrf.mxu1 }
 0x151   : > { %v657_v43 = vadd.f32 %v921_v37, %v649_v42  ;;  %680 = vrot.lane.b32.xlu0 %v649_v42, %s947_s16  ;;  %s423_s16 = scalar_lea.vmem %s1101_s10, %s1017_s20 }
 0x153   : > { %v661_v44 = vmin.f32 %v657_v43, 20.0  ;;  %vm659_vm11 = vcmp.gt.f32.partialorder %v657_v43, 20.0 }
 0x155   : > { %v931_v45 = vpop.eup %930  ;;  %v664_v46 = vmul.f32 1.442695, %v661_v44 }
 0x156   : > { %v666_v47 = vadd.f32 1.0, %v931_v45 }
 0x157   : > { %932 = vpow2.f32 %v664_v46 }
 0x158   : > { %934 = vlog2.f32 %v666_v47 }
 0x15d   : > { %v933_v48 = vpop.eup %932 }
 0x15e   : > { %v935_v49 = vpop.eup %934  ;;  %v667_v50 = vadd.f32 1.0, %v933_v48 }
 0x15f   : > { %v669_v51 = vmul.f32 0.6931472, %v935_v49 }
 0x160   : > { %936 = vlog2.f32 %v667_v50 }
 0x161   : > { %v672_v52 = vsel %vm658_vm10, %v656_v39, %v669_v51 }
 0x162   : > { %674 = vst.msk [vmem:[%s417_s12] sm:$0xff] %vm471_vm8, %v672_v52 }
 0x166   : > { %v937_v53 = vpop.eup %936 }
 0x167   : > { %v671_v54 = vmul.f32 0.6931472, %v937_v53 }
 0x169   : > { %v673_v55 = vsel %vm659_vm11, %v657_v43, %v671_v54 }
 0x16a   : > { %675 = vst.msk [vmem:[%s417_s12 + $0x8] sm:$0xff] %vm471_vm8, %v673_v55 }
 0x1bb   : > { %v679_v56 = vpop.permute.xlu1 %678 }
 0x1bc   : > { %684 = vst.msk [vmem:[%s423_s16] sm:$0xff] %vm445_vm0, %v679_v56 }
 0x1c3   : > { %v681_v57 = vpop.permute.xlu0 %680 }
 0x1c4   : > { %685 = vst.msk [vmem:[%s423_s16 + $0x8] sm:$0xff] %vm445_vm0, %v681_v57 }
 0x1c5 PF: > { %s21_s13 = sadd.s32 1, %s944_s13  }
 0x1c6   : > { %p18_p4 = scmp.ge.s32.totalorder %s21_s13, 4  }
 0x1c8   :  { %20 = sbr.rel (!%p18_p4) target bundleno = 1 (0x1), region = 117 }

// kernel: mamba_classifier_forward.9
= control target key start
LH: loop header
LB: loop body
LE: loop exit
PB: predicated region body
PF: predicated region fallthrough
CT: control target
= control target key end

     0   :  { %vm20_vm0 = vcmask 254976   ;;  %vm27_vm1 = vcmask 261120   ;;  %v154_v2 = vmov 0.0   ;;  %s207_s0 = inlined_call_operand.vmem [shape: f32[2,16,32], index: 0, kind: input, shape index: {}]   ;;  %s208_s1 = inlined_call_operand.vmem [shape: bf16[32,10], index: 1, kind: input, shape index: {}]   ;;  %s209_s2 = inlined_call_operand.vmem [shape: f32[1,10], index: 2, kind: input, shape index: {}]   ;;  %s210_s3 = inlined_call_operand.hbm [shape: f32[2,10], index: 3, kind: output, shape index: {}]  }
   0x1   :  { %v124_v0 = vld [vmem:[%s208_s1 + $0x8] sm:$0xff]  ;;  %v23_v1 = vld [vmem:[%s207_s0] sm:$0xff]  ;;  %21 = vst.msk [vmem:[#allocation2] sm:$0x3] %vm20_vm0, %v154_v2  ;;  %v25_v4 = vld [vmem:[%s207_s0 + $0x10] sm:$0xff] }
   0x2   :  { %v24_v3 = vld [vmem:[%s207_s0 + $0x8] sm:$0xff]  ;;  %v26_v5 = vld [vmem:[%s207_s0 + $0x18] sm:$0xff]  ;;  %v28_v6 = vsel %vm27_vm1, %v23_v1, 0.0  ;;  %89 = vmatpush.bf16.msra.mxu0 %v124_v0  ;;  %v123_v7 = vld [vmem:[%s208_s1] sm:$0xff]  ;;  %v37_v9 = vsel %vm27_vm1, %v25_v4, 0.0 }
   0x3   :  { %v29_v8 = vsel %vm27_vm1, %v24_v3, 0.0  ;;  %v38_v10 = vsel %vm27_vm1, %v26_v5, 0.0 }
   0x4   :  { %v30_v11 = vadd.f32 %v29_v8, %v28_v6  ;;  %v39_v12 = vadd.f32 %v38_v10, %v37_v9 }
   0x5   :  { %8 = vsyncpa [#allocation4], 0  ;;  %vm48_vm2 = vcmask 1041409   ;;  %v127_v31 = vld [vmem:[%s209_s2] ss:$0 sm:$0xff]  ;;  %s155_s24 = smov [#allocation3]  }
   0x6   :  { %v31_v13 = vrot.slane %v30_v11, 4  ;;  %v40_v14 = vrot.slane %v39_v12, 4  ;;  %90 = vmatpush.bf16.msra.mxu0 %v123_v7  ;;  %s103_s25 = sshll.u32 %s155_s24, 4  ;;  %s105_s28 = sshll.u32 %s210_s3, 4  ;;  %vm96_vm3 = vcmask 74752   ;;  %s104_s25 = int_to_ptr.vmem [resolvable:$true] %s103_s25  ;;  %s106_s28 = int_to_ptr.hbm [resolvable:$true] %s105_s28 }
   0x8   :  { %v32_v15 = vadd.f32 %v31_v13, %v30_v11  ;;  %v41_v16 = vadd.f32 %v40_v14, %v39_v12  ;;  %v22_v23 = vld [vmem:[#allocation2] sm:$0x3] }
   0xa   :  { %v33_v17 = vrot.slane %v32_v15, 2  ;;  %v42_v18 = vrot.slane %v41_v16, 2 }
   0xc   :  { %v34_v19 = vadd.f32 %v33_v17, %v32_v15  ;;  %v43_v20 = vadd.f32 %v42_v18, %v41_v16 }
   0xe   :  { %v35_v21 = vrot.slane %v34_v19, 1  ;;  %v44_v22 = vrot.slane %v43_v20, 1 }
  0x10   :  { %v36_v24 = vadd.f32 %v35_v21, %v34_v19  ;;  %v45_v25 = vadd.f32 %v44_v22, %v43_v20 }
  0x12   :  { %v49_v26 = vsel %vm48_vm2, %v45_v25, %v36_v24 }
  0x13   :  { %v51_v27 = vadd.f32 %v49_v26, %v22_v23 }
  0x15   :  { %53 = vst.msk [vmem:[#allocation2] sm:$0x3] %vm20_vm0, %v51_v27 }
  0x1c   :  { %v57_v28 = vld [vmem:[#allocation2] sm:$0x3] }
  0x1d   :  { %v58_v29 = vmul.f32 0.0625, %v57_v28 }
  0x1f   :  { %v59_v30 = vpack.c.bf16 %v58_v29, %v58_v29 }
  0x21   :  { %122 = vmatmul.msk.bf16.vlgmr.msra.gmra.mxu0 %vm27_vm1, %v59_v30 }
  0x9e   :  { %v92_v32 = vpop.f32.mrf.mxu0 }
  0x9f   :  { %v93_v33 = vadd.f32 %v127_v31, %v92_v32 }
  0xa1   :  { %97 = vst.msk [vmem:[#allocation3] sm:$0x3] %vm96_vm3, %v93_v33 }
  0xa2   :  { %108 = dma.vmem_to_hbm [thread:$0]  %s104_s25, 32, %s106_s28, [#allocation4]  }
  0xa6   :  { %v94_v34 = vpop.f32.mrf.mxu0 }
  0xa7   :  { %152 = dma.done.wait [#allocation4], 32  }
  0xa8   :  { %153 = vsyncadd [#allocation4], 4294967264 }
  0xa9   :  { %113 = vsyncpa [#allocation4], 1 }

// kernel: mamba_classifier_forward.6
= control target key start
LH: loop header
LB: loop body
LE: loop exit
PB: predicated region body
PF: predicated region fallthrough
CT: control target
= control target key end

     0   :  { %s1316_s24 = smov 0   ;;  %s1674_s0 = inlined_call_operand.vmem [shape: f32[2,16,64], index: 0, kind: input, shape index: {}]   ;;  %s1675_s1 = inlined_call_operand.vmem [shape: f32[2,16,64], index: 1, kind: input, shape index: {}]   ;;  %s1676_s2 = inlined_call_operand.vmem [shape: f32[2,16,32], index: 2, kind: input, shape index: {}]   ;;  %s1677_s3 = inlined_call_operand.vmem [shape: f32[2,16,64], index: 3, kind: input, shape index: {}]   ;;  %s1678_s4 = inlined_call_operand.vmem [shape: f32[16,64], index: 4, kind: input, shape index: {}]   ;;  %s1679_s5 = inlined_call_operand.vmem [shape: f32[1,64], index: 5, kind: input, shape index: {}]   ;;  %s1680_s6 = inlined_call_operand.vmem [shape: bf16[64,32], index: 6, kind: input, shape index: {}]   ;;  %s1681_s7 = inlined_call_operand.vmem [shape: f32[2,16,32], index: 7, kind: output, shape index: {}]  }
   0x1 LB: > { %s1074_s25 = sadd.s32 4294967295, %s1253_s24   ;;  %p1078_p0 = scmp.ge.s32.totalorder %s1253_s24, 1  ;;  %s1253_s24 = sphi %s1316_s24, %s17_s24  }
   0x2   : > { %p267_p1 = scmp.lt.s32.totalorder %s1253_s24, 3 }
   0x4   : > { %p268_p2 = pnand %p1078_p0, %p267_p1 }
   0x5   : > { %p314_p3 = scmp.lt.s32.totalorder (!%p268_p2), %s1074_s25, 1  ;;  %s1369_s26 = smov (!%p268_p2), 0  }
   0x6   : > { %271 = sbr.rel (%p268_p2) target bundleno = 778 (0x30a), region = 48 }
   0xb   : > { %v340_v0 = vld [vmem:[%s1678_s4] sm:$0xff]  ;;  %v341_v1 = vld [vmem:[%s1678_s4 + $0x8] sm:$0xff]  ;;  %s1683_s25 = smov (!%p314_p3, %s1074_s25), 1  ;;  %v1365_v9 = vmov 0.0   ;;  %v1367_v10 = vmov 0.0  }
   0xc   : > { %v1333_v2 = vld [vmem:[%s1679_s5] sm:$0x1]  ;;  %v342_v3 = vmul.f32 1.442695, %v340_v0  ;;  %v344_v4 = vmul.f32 1.442695, %v341_v1 }
   0xd   : > { %s1335_s9 = sshll.u32 %s1683_s25, 4 }
   0xe   : > { %1160 = vpow2.f32 %v342_v3  ;;  %s318_s12 = scalar_lea.vmem %s1674_s0, %s1335_s9  ;;  %s323_s15 = scalar_lea.vmem %s1675_s1, %s1335_s9 }
   0xf   : > { %1162 = vpow2.f32 %v344_v4  ;;  %s328_s18 = scalar_lea.vmem %s1676_s2, %s1335_s9  ;;  %s1353_s21 = scalar_lea.vmem %s1677_s3, %s1335_s9 }
  0x10   : > { %s1359_s25 = scalar_lea.vmem %s1681_s7, %s1335_s9 }
  0x14   : > { %v1161_v5 = vpop.eup %1160 }
  0x15   : > { %v1163_v6 = vpop.eup %1162  ;;  %v1361_v7 = vsub.f32 0.0, %v1161_v5 }
  0x16   : > { %v1363_v8 = vsub.f32 0.0, %v1163_v6 }
  0x17 LB: >> { %s1381_s27 = sshll.u32 %s1265_s26, 3  ;;  %v1267_v15 = vmov 1   ;;  %v1268_v16 = vmov 0   ;;  %v1269_v17 = vmov 5   ;;  %s1270_s13 = smov 112   ;;  %v1271_v20 = vmov 7   ;;  %s1265_s26 = sphi %s1369_s26, %s354_s26   ;;  %v1261_v10 = vphi %v1367_v10, %v1568_v10   ;;  %v1257_v9 = vphi %v1365_v9, %v1557_v9  }
  0x18   : >> { %s362_s30 = scalar_lea.vmem %s328_s18, %s1381_s27  ;;  %s360_s11 = scalar_lea.vmem %s318_s12, %s1381_s27  ;;  %1165 = vset.pattern.permute.xlu2 %v1267_v15  ;;  %1164 = vset.pattern.permute.xlu1 %v1268_v16  ;;  %v1272_v21 = vmov 2   ;;  %v1273_v22 = vmov 4   ;;  %v1274_v23 = vmov 3   ;;  %v1275_v24 = vmov 6  }
  0x19   : >> { %v363_v11 = vld [vmem:[%s362_s30] sm:$0xff]  ;;  %s358_s17 = scalar_lea.vmem %s323_s15, %s1381_s27  ;;  %vm534_vm0 = vcmask 523264   ;;  %vm848_vm1 = vcmask 1040384   ;;  %vm850_vm2 = vcmask 1041408   ;;  %vm852_vm3 = vcmask 1042432   ;;  %s862_s19 = scalar_lea.vmem [#allocation2], %s1381_s27 }
  0x1a   : >> { %437 = vxpose.xlu0.b32.start.end [1/1] (short) (narrow) %v363_v11, 16  ;;  %v1395_v12 = vld [vmem:[%s360_s11] sm:$0xff]  ;;  %vm854_vm4 = vcmask 1043456   ;;  %vm856_vm5 = vcmask 1044480   ;;  %vm858_vm6 = vcmask 1045504   ;;  %vm860_vm7 = vcmask 1046528  }
  0x1b   : >> { %581 = vst [vmem:[#allocation1] sm:$0xff] %v1395_v12  ;;  %v1433_v26 = vld [vmem:[%s358_s17] sm:$0xff]  ;;  %s354_s26 = sadd.s32 1, %s1265_s26  }
  0x1c   : >> { %v1438_v27 = vmul.f32 %v1395_v12, %v1433_v26  ;;  %v373_v31 = vperm.slane %v1433_v26, 0  ;;  %v366_v32 = vrot.slane %v1433_v26, 1  ;;  %v367_v37 = vrot.slane %v1433_v26, 2  ;;  %p351_p4 = scmp.ge.s32.totalorder %s354_s26, 2  }
  0x1d   : >> { %v368_v40 = vrot.slane %v1433_v26, 3  ;;  %v369_v47 = vrot.slane %v1433_v26, 4  ;;  %v370_v54 = vrot.slane %v1433_v26, 5  ;;  %v371_v61 = vrot.slane %v1433_v26, 6 }
  0x1e   : >> { %v556_v28 = vperm.slane %v1438_v27, 1  ;;  %v597_v33 = vperm.slane %v1438_v27, 2  ;;  %v389_v34 = vmul.f32 %v373_v31, %v1361_v7  ;;  %v374_v35 = vperm.slane %v366_v32, 0 }
  0x1f   : >> { %v375_v42 = vperm.slane %v367_v37, 0  ;;  %v637_v43 = vperm.slane %v1438_v27, 3  ;;  %v1454_v44 = vperm.slane %v368_v40, 0  ;;  %v390_v49 = vmul.f32 %v373_v31, %v1363_v8 }
  0x20   : >> { %v405_v39 = vmul.f32 1.442695, %v389_v34  ;;  %v391_v41 = vmul.f32 %v374_v35, %v1361_v7  ;;  %v1464_v55 = vperm.slane %v369_v47, 0  ;;  %v517_v56 = vperm.slane %v1438_v27, 0 }
  0x21   : >> { %v393_v46 = vmul.f32 %v375_v42, %v1361_v7  ;;  %v395_v51 = vmul.f32 %v1454_v44, %v1361_v7  ;;  %v407_v57 = vmul.f32 1.442695, %v390_v49  ;;  %v677_v60 = vperm.slane %v1438_v27, 4 }
  0x22   : >> { %v1398_v13 = vld [vmem:[#allocation1 + $0x1] ss:$9 sm:$0xff]  ;;  %1195 = vpow2.f32 %v405_v39  ;;  %v409_v45 = vmul.f32 1.442695, %v391_v41  ;;  %v392_v62 = vmul.f32 %v374_v35, %v1363_v8  ;;  %v1471_v0 = vperm.slane %v370_v54, 0 }
  0x23   : >> { %621 = vst [vmem:[#allocation1] sm:$0xff] %v1395_v12  ;;  %v413_v53 = vmul.f32 1.442695, %v393_v46  ;;  %v417_v58 = vmul.f32 1.442695, %v395_v51  ;;  %v397_v1 = vmul.f32 %v1464_v55, %v1361_v7  ;;  %v372_v31 = vrot.slane %v1433_v26, 7 }
  0x24   : >> { %1197 = vpow2.f32 %v409_v45  ;;  %v394_v41 = vmul.f32 %v375_v42, %v1363_v8 }
  0x25   : >> { %1199 = vpow2.f32 %v413_v53  ;;  %v1488_v45 = vperm.slane %v372_v31, 0 }
  0x26   : >> { %1201 = vpow2.f32 %v407_v57  ;;  %v415_v53 = vmul.f32 1.442695, %v394_v41  ;;  %v398_v41 = vmul.f32 %v1464_v55, %v1363_v8 }
  0x27   : >> { %1203 = vpow2.f32 %v417_v58  ;;  %v403_v54 = vmul.f32 %v1488_v45, %v1361_v7 }
  0x28   : >> { %v1196_v52 = vpop.eup %1195 }
  0x29   : >> { %v505_v59 = vmul.f32 %v1261_v10, %v1196_v52 }
  0x2a   : >> { %v1401_v14 = vld [vmem:[#allocation1 + $0x2] ss:$9 sm:$0xff]  ;;  %v1198_v3 = vpop.eup %1197 }
  0x2b   : >> { %661 = vst [vmem:[#allocation1] sm:$0xff] %v1395_v12  ;;  %v1200_v34 = vpop.eup %1199 }
  0x2c   : >> { %v1202_v35 = vpop.eup %1201 }
  0x2d   : >> { %v1204_v39 = vpop.eup %1203 }
  0x81   : >> { %1174 = vset.pattern.permute.xlu0 %v1269_v17 }
  0x90   : >> { %470 = vrot.lane.b32.xlu0 %v363_v11, %s1270_s13  ;;  %v1477_v11 = vperm.slane %v371_v61, 0  ;;  %v717_v61 = vperm.slane %v1438_v27, 5 }
  0x92   : >> { %v401_v37 = vmul.f32 %v1477_v11, %v1361_v7 }
  0x94   : >> { %v429_v51 = vmul.f32 1.442695, %v401_v37 }
  0xbe   : >> { %v1407_v18 = vpop.trf.xlu0 }
  0xbf   : >> { %710 = vperm.xlu0 %1174, %v1407_v18   ;;  %549 = vperm.xlu2 %1165, %v1407_v18  }
  0xc0   : >> { %509 = vperm.xlu1 %1164, %v1407_v18  }
  0xc6   : >> { %v454_v19 = vpop.trf.xlu0 }
  0xc7   : >> { %1179 = vset.pattern.permute.xlu0 %v1271_v20  ;;  %1166 = vset.pattern.permute.xlu2 %v1272_v21 }
  0xc8   : >> { %1173 = vset.pattern.permute.xlu1 %v1273_v22  ;;  %590 = vperm.xlu2 %1166, %v1407_v18  }
  0xc9   : >> { %794 = vperm.xlu0 %1179, %v454_v19   ;;  %674 = vperm.xlu1 %1173, %v454_v19  }
  0xd0   : >> { %1167 = vset.pattern.permute.xlu2 %v1274_v23 }
  0xd1   : >> { %1176 = vset.pattern.permute.xlu1 %v1275_v24  ;;  %630 = vperm.xlu2 %1167, %v1407_v18  }
  0xd2   : >> { %750 = vperm.xlu1 %1176, %v1407_v18  }
  0xd9   : >> { %1168 = vset.pattern.permute.xlu2 %v1273_v22 }
  0xda   : >> { %670 = vperm.xlu2 %1168, %v1407_v18  }
  0xe2   : >> { %1169 = vset.pattern.permute.xlu2 %v1268_v16 }
  0xe3   : >> { %514 = vperm.xlu2 %1169, %v454_v19  }
  0xeb   : >> { %1170 = vset.pattern.permute.xlu2 %v1267_v15 }
  0xec   : >> { %553 = vperm.xlu2 %1170, %v454_v19  }
  0xf4   : >> { %1171 = vset.pattern.permute.xlu2 %v1272_v21 }
  0xf5   : >> { %594 = vperm.xlu2 %1171, %v454_v19  }
  0xfd   : >> { %1172 = vset.pattern.permute.xlu2 %v1274_v23 }
  0xfe   : >> { %634 = vperm.xlu2 %1172, %v454_v19  }
 0x102   : >> { %v471_v25 = vpop.permute.xlu0 %470 }
 0x106   : >> { %1175 = vset.pattern.permute.xlu2 %v1269_v17 }
 0x107   : >> { %473 = vxpose.xlu1.b32.start.end [1/1] (short) (narrow) %v471_v25, 16  ;;  %714 = vperm.xlu2 %1175, %v454_v19   ;;  %v399_v25 = vmul.f32 %v1471_v0, %v1361_v7  ;;  %v1114_v7 = vld [vmem:[%s1680_s6] sm:$0xff] (%p351_p4) }
 0x109   : >> { %v425_v40 = vmul.f32 1.442695, %v399_v25 }
 0x10f   : >> { %1177 = vset.pattern.permute.xlu2 %v1275_v24 }
 0x110   : >> { %754 = vperm.xlu2 %1177, %v454_v19   ;;  %v411_v19 = vmul.f32 1.442695, %v392_v62  ;;  %v396_v62 = vmul.f32 %v1454_v44, %v1363_v8 }
 0x112   : >> { %1205 = vpow2.f32 %v411_v19  ;;  %v419_v31 = vmul.f32 1.442695, %v396_v62  ;;  %v404_v62 = vmul.f32 %v1488_v45, %v1363_v8 }
 0x118   : >> { %1180 = vset.pattern.permute.xlu2 %v1268_v16  ;;  %v1206_v42 = vpop.eup %1205 }
 0x119   : >> { %v550_v29 = vpop.permute.xlu2 %549 }
 0x11a   : >> { %v557_v30 = vmul.f32 %v556_v28, %v550_v29  ;;  %v421_v29 = vmul.f32 1.442695, %v397_v1 }
 0x11c   : >> { %1207 = vpow2.f32 %v421_v29 }
 0x11d   : >> { %1209 = vpow2.f32 %v425_v40 }
 0x11e   : >> { %1211 = vpow2.f32 %v429_v51  ;;  %v400_v51 = vmul.f32 %v1471_v0, %v1363_v8 }
 0x11f   : >> { %1213 = vpow2.f32 %v415_v53 }
 0x120   : >> { %v427_v55 = vmul.f32 1.442695, %v400_v51 }
 0x122   : >> { %v591_v36 = vpop.permute.xlu2 %590  ;;  %v1208_v58 = vpop.eup %1207 }
 0x123   : >> { %v598_v38 = vmul.f32 %v597_v33, %v591_v36 }
 0x12b   : >> { %v631_v48 = vpop.permute.xlu2 %630 }
 0x12c   : >> { %v638_v50 = vmul.f32 %v637_v43, %v631_v48  ;;  %v506_v48 = vmul.f32 %v1257_v9, %v1202_v35 }
 0x131   : >> { %v711_v1 = vpop.permute.xlu0 %710 }
 0x132   : >> { %v510_v63 = vpop.permute.xlu1 %509  ;;  %v718_v19 = vmul.f32 %v717_v61, %v711_v1 }
 0x133   : >> { %v518_v4 = vmul.f32 %v517_v56, %v510_v63  ;;  %v1210_v63 = vpop.eup %1209 }
 0x134   : >> { %v671_v5 = vpop.permute.xlu2 %670 }
 0x135   : >> { %v1475_v6 = vadd.f32 %v518_v4, %v505_v59  ;;  %v678_v10 = vmul.f32 %v677_v60, %v671_v5  ;;  %v757_v4 = vperm.slane %v1438_v27, 6  ;;  %v1212_v5 = vpop.eup %1211 }
 0x137   : >> { %v546_v32 = vmul.f32 %v1198_v3, %v1475_v6 }
 0x139   : >> { %v1483_v36 = vadd.f32 %v557_v30, %v546_v32  ;;  %v1214_v32 = vpop.eup %1213 }
 0x13b   : >> { %v587_v46 = vmul.f32 %v1200_v34, %v1483_v36  ;;  %v675_v26 = vpop.permute.xlu1 %674 }
 0x13c   : >> { %v1491_v47 = vmul.f32 %v677_v60, %v675_v26 }
 0x13d   : >> { %v1494_v30 = vadd.f32 %v598_v38, %v587_v46  ;;  %v515_v49 = vpop.permute.xlu2 %514  ;;  %v433_v38 = vmul.f32 1.442695, %v403_v54 }
 0x13e   : >> { %v519_v52 = vmul.f32 %v517_v56, %v515_v49  ;;  %v423_v49 = vmul.f32 1.442695, %v398_v41 }
 0x13f   : >> { %v627_v57 = vmul.f32 %v1204_v39, %v1494_v30  ;;  %1215 = vpow2.f32 %v433_v38 }
 0x140   : >> { %v1499_v59 = vadd.f32 %v519_v52, %v506_v48  ;;  %1217 = vpow2.f32 %v419_v31  ;;  %v797_v31 = vperm.slane %v1438_v27, 7 }
 0x141   : >> { %v1501_v60 = vadd.f32 %v638_v50, %v627_v57  ;;  %1219 = vpow2.f32 %v423_v49 }
 0x142   : >> { %v547_v9 = vmul.f32 %v1206_v42, %v1499_v59  ;;  %v402_v42 = vmul.f32 %v1477_v11, %v1363_v8  ;;  %1221 = vpow2.f32 %v427_v55 }
 0x143   : >> { %v667_v56 = vmul.f32 %v1208_v58, %v1501_v60 }
 0x144   : >> { %v751_v34 = vpop.permute.xlu1 %750 }
 0x145   : >> { %v1508_v3 = vadd.f32 %v678_v10, %v667_v56  ;;  %v758_v37 = vmul.f32 %v757_v4, %v751_v34  ;;  %v1216_v40 = vpop.eup %1215 }
 0x146   : >> { %v554_v50 = vpop.permute.xlu2 %553  ;;  %v1218_v52 = vpop.eup %1217 }
 0x147   : >> { %v707_v25 = vmul.f32 %v1210_v63, %v1508_v3  ;;  %v558_v29 = vmul.f32 %v556_v28, %v554_v50  ;;  %v435_v50 = vmul.f32 1.442695, %v404_v62 }
 0x149   : >> { %v1514_v35 = vadd.f32 %v718_v19, %v707_v25  ;;  %v1516_v44 = vadd.f32 %v558_v29, %v547_v9  ;;  %v1220_v9 = vpop.eup %1219 }
 0x14a   : >> { %v1222_v56 = vpop.eup %1221 }
 0x14b   : >> { %v747_v10 = vmul.f32 %v1212_v5, %v1514_v35  ;;  %v588_v39 = vmul.f32 %v1214_v32, %v1516_v44 }
 0x14d   : >> { %v1522_v46 = vadd.f32 %v758_v37, %v747_v10 }
 0x14f   : >> { %v595_v28 = vpop.permute.xlu2 %594  ;;  %v1525_v26 = vmul.f32 %v1216_v40, %v1522_v46 }
 0x150   : >> { %v599_v48 = vmul.f32 %v597_v33, %v595_v28  ;;  %v431_v33 = vmul.f32 1.442695, %v402_v42 }
 0x152   : >> { %v1531_v53 = vadd.f32 %v599_v48, %v588_v39  ;;  %1223 = vpow2.f32 %v431_v33 }
 0x153   : >> { %1225 = vpow2.f32 %v435_v50 }
 0x154   : >> { %v628_v54 = vmul.f32 %v1218_v52, %v1531_v53 }
 0x158   : >> { %v635_v57 = vpop.permute.xlu2 %634  ;;  %v1224_v5 = vpop.eup %1223 }
 0x159   : >> { %v639_v58 = vmul.f32 %v637_v43, %v635_v57  ;;  %v1226_v32 = vpop.eup %1225 }
 0x15a   : >> { %1178 = vset.pattern.permute.xlu1 %v1271_v20 }
 0x15b   : >> { %v1539_v0 = vadd.f32 %v639_v58, %v628_v54 }
 0x15d   : >> { %v668_v38 = vmul.f32 %v1220_v9, %v1539_v0 }
 0x15f   : >> { %v1545_v11 = vadd.f32 %v1491_v47, %v668_v38  ;;  %v795_v47 = vpop.permute.xlu0 %794 }
 0x160   : >> { %v799_v10 = vmul.f32 %v797_v31, %v795_v47 }
 0x161   : >> { %v715_v63 = vpop.permute.xlu2 %714  ;;  %v708_v1 = vmul.f32 %v1222_v56, %v1545_v11 }
 0x162   : >> { %v719_v43 = vmul.f32 %v717_v61, %v715_v63 }
 0x164   : >> { %v1548_v19 = vadd.f32 %v719_v43, %v708_v1 }
 0x166   : >> { %v748_v25 = vmul.f32 %v1224_v5, %v1548_v19 }
 0x169   : >> { %790 = vperm.xlu1 %1178, %v1407_v18  }
 0x16a   : >> { %v755_v29 = vpop.permute.xlu2 %754 }
 0x16b   : >> { %v759_v45 = vmul.f32 %v757_v4, %v755_v29  ;;  %v663_v4 = vld [vmem:[#allocation1 + $0x3] ss:$9 sm:$0xff] }
 0x16c   : >> { %701 = vst [vmem:[#allocation1] sm:$0xff] %v1395_v12  ;;  %v665_v62 = vmul.f32 %v663_v4, %v1333_v2 }
 0x16d   : >> { %v1553_v34 = vadd.f32 %v759_v45, %v748_v25 }
 0x16f   : >> { %v788_v61 = vmul.f32 %v1226_v32, %v1553_v34 }
 0x171   : >> { %1190 = vset.pattern.permute.xlu1 %v1274_v23  ;;  %v1557_v9 = vadd.f32 %v799_v10, %v788_v61  }
 0x1ab   : >> { %v489_v37 = vpop.trf.xlu1 }
 0x1ac   : >> { %803 = vperm.xlu0 %1179, %v489_v37   ;;  %524 = vperm.xlu2 %1180, %v489_v37  }
 0x1b3   : >> { %v490_v39 = vpop.trf.xlu1 }
 0x1b4   : >> { %1181 = vset.pattern.permute.xlu2 %v1267_v15  ;;  %647 = vperm.xlu1 %1190, %v490_v39  }
 0x1b5   : >> { %562 = vperm.xlu2 %1181, %v489_v37  }
 0x1bc   : >> { %1191 = vset.pattern.permute.xlu1 %v1273_v22 }
 0x1bd   : >> { %1182 = vset.pattern.permute.xlu2 %v1272_v21  ;;  %687 = vperm.xlu1 %1191, %v490_v39  }
 0x1be   : >> { %603 = vperm.xlu2 %1182, %v489_v37  }
 0x1c5   : >> { %1192 = vset.pattern.permute.xlu1 %v1269_v17 }
 0x1c6   : >> { %1183 = vset.pattern.permute.xlu2 %v1274_v23  ;;  %727 = vperm.xlu1 %1192, %v490_v39  }
 0x1c7   : >> { %643 = vperm.xlu2 %1183, %v489_v37  }
 0x1ce   : >> { %1193 = vset.pattern.permute.xlu1 %v1275_v24 }
 0x1cf   : >> { %1184 = vset.pattern.permute.xlu2 %v1273_v22  ;;  %767 = vperm.xlu1 %1193, %v490_v39  }
 0x1d0   : >> { %683 = vperm.xlu2 %1184, %v489_v37  }
 0x1d8   : >> { %1185 = vset.pattern.permute.xlu2 %v1269_v17 }
 0x1d9   : >> { %723 = vperm.xlu2 %1185, %v489_v37  }
 0x1db   : >> { %v791_v18 = vpop.permute.xlu1 %790 }
 0x1dc   : >> { %v798_v27 = vmul.f32 %v797_v31, %v791_v18 }
 0x1de   : >> { %v1568_v10 = vadd.f32 %v798_v27, %v1525_v26  }
 0x1e1   : >> { %1186 = vset.pattern.permute.xlu2 %v1275_v24 }
 0x1e2   : >> { %763 = vperm.xlu2 %1186, %v489_v37  }
 0x1ea   : >> { %1187 = vset.pattern.permute.xlu2 %v1268_v16 }
 0x1eb   : >> { %529 = vperm.xlu2 %1187, %v490_v39  }
 0x1f3   : >> { %1188 = vset.pattern.permute.xlu2 %v1267_v15  ;;  %v703_v15 = vld [vmem:[#allocation1 + $0x4] ss:$9 sm:$0xff] }
 0x1f4   : >> { %566 = vperm.xlu2 %1188, %v490_v39   ;;  %741 = vst [vmem:[#allocation1] sm:$0xff] %v1395_v12  ;;  %v705_v37 = vmul.f32 %v703_v15, %v1333_v2 }
 0x1fc   : >> { %1189 = vset.pattern.permute.xlu2 %v1272_v21 }
 0x1fd   : >> { %607 = vperm.xlu2 %1189, %v490_v39  }
 0x205   : >> { %1194 = vset.pattern.permute.xlu2 %v1271_v20 }
 0x206   : >> { %v525_v17 = vpop.permute.xlu2 %524  ;;  %807 = vperm.xlu2 %1194, %v490_v39  }
 0x207   : >> { %v1576_v22 = vmul.f32 %v525_v17, %v1475_v6  ;;  %v743_v6 = vld [vmem:[#allocation1 + $0x5] ss:$9 sm:$0xff] }
 0x208   : >> { %781 = vst [vmem:[#allocation1] sm:$0xff] %v1395_v12  ;;  %v745_v15 = vmul.f32 %v743_v6, %v1333_v2 }
 0x20f   : >> { %v563_v23 = vpop.permute.xlu2 %562  ;;  %v1592_v42 = vld [vmem:[#allocation1 + $0x6] ss:$9 sm:$0xff] }
 0x210   : >> { %v1579_v24 = vmul.f32 %v563_v23, %v1483_v36  ;;  %821 = vst [vmem:[#allocation1] sm:$0xff] %v1395_v12 }
 0x218   : >> { %v1582_v16 = vpop.permute.xlu2 %603 }
 0x221   : >> { %v644_v21 = vpop.permute.xlu2 %643 }
 0x222   : >> { %v650_v20 = vmul.f32 %v644_v21, %v1501_v60 }
 0x224   : >> { %v652_v36 = vsel %vm534_vm0, %v650_v20, 0.0 }
 0x226   : >> { %v648_v40 = vpop.permute.xlu1 %647 }
 0x227   : >> { %v651_v41 = vmul.f32 %v648_v40, %v1539_v0 }
 0x229   : >> { %v653_v28 = vsel %vm534_vm0, %v651_v41, 0.0 }
 0x22a   : >> { %v654_v26 = vadd.f32 %v653_v28, %v652_v36  ;;  %v684_v48 = vpop.permute.xlu2 %683 }
 0x22b   : >> { %v690_v52 = vmul.f32 %v684_v48, %v1508_v3 }
 0x22c   : >> { %v655_v49 = vrot.slane %v654_v26, 4 }
 0x22d   : >> { %v692_v58 = vsel %vm534_vm0, %v690_v52, 0.0 }
 0x22e   : >> { %v656_v51 = vadd.f32 %v655_v49, %v654_v26 }
 0x22f   : >> { %v688_v54 = vpop.permute.xlu1 %687 }
 0x230   : >> { %v657_v55 = vrot.slane %v656_v51, 2  ;;  %v691_v60 = vmul.f32 %v688_v54, %v1545_v11 }
 0x232   : >> { %v658_v57 = vadd.f32 %v657_v55, %v656_v51  ;;  %v693_v33 = vsel %vm534_vm0, %v691_v60, 0.0 }
 0x233   : >> { %v694_v0 = vadd.f32 %v693_v33, %v692_v58  ;;  %v724_v38 = vpop.permute.xlu2 %723 }
 0x234   : >> { %v659_v56 = vrot.slane %v658_v57, 1  ;;  %v730_v43 = vmul.f32 %v724_v38, %v1514_v35 }
 0x235   : >> { %v695_v63 = vrot.slane %v694_v0, 4 }
 0x236   : >> { %v660_v3 = vadd.f32 %v659_v56, %v658_v57  ;;  %v732_v31 = vsel %vm534_vm0, %v730_v43, 0.0  ;;  %v571_v57 = vsel %vm534_vm0, %v1579_v24, 0.0 }
 0x237   : >> { %v696_v1 = vadd.f32 %v695_v63, %v694_v0  ;;  %v610_v0 = vmul.f32 %v1582_v16, %v1494_v30  ;;  %v585_v30 = vmul.f32 %v1398_v13, %v1333_v2 }
 0x238   : >> { %v1599_v11 = vadd.f32 %v665_v62, %v660_v3  ;;  %v728_v50 = vpop.permute.xlu1 %727 }
 0x239   : >> { %v697_v5 = vrot.slane %v696_v1, 2  ;;  %v731_v25 = vmul.f32 %v728_v50, %v1548_v19 }
 0x23b   : >> { %v698_v29 = vadd.f32 %v697_v5, %v696_v1  ;;  %v733_v45 = vsel %vm534_vm0, %v731_v25, 0.0 }
 0x23c   : >> { %v734_v32 = vadd.f32 %v733_v45, %v732_v31  ;;  %v764_v47 = vpop.permute.xlu2 %763 }
 0x23d   : >> { %v699_v61 = vrot.slane %v698_v29, 1  ;;  %v770_v35 = vmul.f32 %v764_v47, %v1522_v46  ;;  %v535_v46 = vsel %vm534_vm0, %v1576_v22, 0.0 }
 0x23e   : >> { %v735_v39 = vrot.slane %v734_v32, 4 }
 0x23f   : >> { %v700_v18 = vadd.f32 %v699_v61, %v698_v29  ;;  %v772_v20 = vsel %vm534_vm0, %v770_v35, 0.0  ;;  %v804_v29 = vpop.permute.xlu0 %803 }
 0x240   : >> { %v736_v27 = vadd.f32 %v735_v39, %v734_v32  ;;  %v544_v32 = vmul.f32 %v1395_v12, %v1333_v2 }
 0x241   : >> { %v1606_v17 = vadd.f32 %v705_v37, %v700_v18  ;;  %v768_v23 = vpop.permute.xlu1 %767 }
 0x242   : >> { %v737_v4 = vrot.slane %v736_v27, 2  ;;  %v771_v19 = vmul.f32 %v768_v23, %v1553_v34 }
 0x244   : >> { %v738_v21 = vadd.f32 %v737_v4, %v736_v27  ;;  %v773_v40 = vsel %vm534_vm0, %v771_v19, 0.0 }
 0x245   : >> { %v774_v41 = vadd.f32 %v773_v40, %v772_v20  ;;  %v530_v36 = vpop.permute.xlu2 %529 }
 0x246   : >> { %v739_v28 = vrot.slane %v738_v21, 1  ;;  %v533_v26 = vmul.f32 %v530_v36, %v1499_v59  ;;  %v625_v36 = vmul.f32 %v1401_v14, %v1333_v2  ;;  %v837_v14 = vrot.slane %v1606_v17, 4  ;;  %v1117_v17 = vld [vmem:[%s1680_s6 + $0x18] sm:$0xff] (%p351_p4) }
 0x247   : >> { %v775_v33 = vrot.slane %v774_v41, 4  ;;  %951 = vmatpush.bf16.msra.mxu0 (%p351_p4), %v1117_v17 }
 0x248   : >> { %v740_v48 = vadd.f32 %v739_v28, %v738_v21  ;;  %v536_v49 = vsel %vm534_vm0, %v533_v26, 0.0  ;;  %v785_v26 = vmul.f32 %v1592_v42, %v1333_v2 }
 0x249   : >> { %v537_v51 = vadd.f32 %v536_v49, %v535_v46  ;;  %v776_v62 = vadd.f32 %v775_v33, %v774_v41 }
 0x24a   : >> { %v1616_v34 = vadd.f32 %v745_v15, %v740_v48 }
 0x24b   : >> { %v538_v52 = vrot.slane %v537_v51, 4  ;;  %v777_v5 = vrot.slane %v776_v62, 2 }
 0x24d   : >> { %v539_v54 = vadd.f32 %v538_v52, %v537_v51  ;;  %v778_v61 = vadd.f32 %v777_v5, %v776_v62 }
 0x24e   : >> { %v567_v55 = vpop.permute.xlu2 %566 }
 0x24f   : >> { %v570_v60 = vmul.f32 %v567_v55, %v1516_v44  ;;  %v540_v59 = vrot.slane %v539_v54, 2  ;;  %v612_v44 = vsel %vm534_vm0, %v610_v0, 0.0  ;;  %v779_v19 = vrot.slane %v778_v61, 1  ;;  %v823_v55 = vld [vmem:[#allocation1 + $0x7] ss:$9 sm:$0xff] }
 0x250   : >> { %v825_v33 = vmul.f32 %v823_v55, %v1333_v2  ;;  %v1115_v2 = vld [vmem:[%s1680_s6 + $0x8] sm:$0xff] (%p351_p4) }
 0x251   : >> { %v572_v6 = vsel %vm534_vm0, %v570_v60, 0.0  ;;  %v541_v38 = vadd.f32 %v540_v59, %v539_v54  ;;  %v780_v15 = vadd.f32 %v779_v19, %v778_v61  ;;  %v834_v60 = vrot.slane %v1599_v11, 5 }
 0x252   : >> { %v573_v58 = vadd.f32 %v572_v6, %v571_v57  ;;  %v840_v6 = vrot.slane %v1616_v34, 3  ;;  %v1116_v34 = vld [vmem:[%s1680_s6 + $0x10] sm:$0xff] (%p351_p4) }
 0x253   : >> { %v542_v43 = vrot.slane %v541_v38, 1  ;;  %v786_v52 = vadd.f32 %v785_v26, %v780_v15  ;;  %952 = vmatpush.bf16.msra.mxu0 (%p351_p4), %v1116_v34 }
 0x254   : >> { %v574_v22 = vrot.slane %v573_v58, 4 }
 0x255   : >> { %v543_v45 = vadd.f32 %v542_v43, %v541_v38 }
 0x256   : >> { %v575_v56 = vadd.f32 %v574_v22, %v573_v58  ;;  %v843_v22 = vrot.slane %v786_v52, 2 }
 0x257   : >> { %v608_v63 = vpop.permute.xlu2 %607  ;;  %v545_v23 = vadd.f32 %v544_v32, %v543_v45  ;;  %953 = vmatpush.bf16.msra.mxu0 (%p351_p4), %v1115_v2 }
 0x258   : >> { %v576_v3 = vrot.slane %v575_v56, 2  ;;  %v611_v1 = vmul.f32 %v608_v63, %v1531_v53  ;;  %v810_v53 = vmul.f32 %v804_v29, %v1568_v10 }
 0x25a   : >> { %v577_v24 = vadd.f32 %v576_v3, %v575_v56  ;;  %v613_v50 = vsel %vm534_vm0, %v611_v1, 0.0  ;;  %v812_v13 = vsel %vm534_vm0, %v810_v53, 0.0  ;;  %v866_v1 = vld [vmem:[%s1353_s21] sm:$0xff] (%p351_p4) }
 0x25b   : >> { %v614_v25 = vadd.f32 %v613_v50, %v612_v44  ;;  %v867_v44 = vld [vmem:[%s1353_s21 + $0x8] sm:$0xff] (%p351_p4)  ;;  %v868_v43 = vsub.f32 (%p351_p4), 0.0, %v866_v1  ;;  %954 = vmatpush.bf16.msra.mxu0 (%p351_p4), %v1114_v7 }
 0x25c   : >> { %v578_v31 = vrot.slane %v577_v24, 1 }
 0x25d   : >> { %v615_v16 = vrot.slane %v614_v25, 4  ;;  %v870_v50 = vmul.f32 (%p351_p4), 1.442695, %v868_v43 }
 0x25e   : >> { %v579_v47 = vadd.f32 %v578_v31, %v577_v24  ;;  %v869_v24 = vsub.f32 (%p351_p4), 0.0, %v867_v44 }
 0x25f   : >> { %v616_v37 = vadd.f32 %v615_v16, %v614_v25  ;;  %1227 = vpow2.f32 (%p351_p4), %v870_v50 }
 0x260   : >> { %v586_v39 = vadd.f32 %v585_v30, %v579_v47  ;;  %v808_v18 = vpop.permute.xlu2 %807  ;;  %v872_v10 = vmul.f32 (%p351_p4), 1.442695, %v869_v24 }
 0x261   : >> { %v617_v27 = vrot.slane %v616_v37, 2  ;;  %v811_v35 = vmul.f32 %v808_v18, %v1557_v9 }
 0x262   : >> { %v828_v4 = vrot.slane %v586_v39, 7  ;;  %1229 = vpow2.f32 (%p351_p4), %v872_v10 }
 0x263   : >> { %v618_v21 = vadd.f32 %v617_v27, %v616_v37  ;;  %v813_v20 = vsel %vm534_vm0, %v811_v35, 0.0 }
 0x264   : >> { %v849_v12 = vsel %vm848_vm1, %v545_v23, %v828_v4  ;;  %v814_v40 = vadd.f32 %v813_v20, %v812_v13  ;;  %vm961_vm1 = vcmask (%p351_p4), 261120  }
 0x265   : >> { %v619_v41 = vrot.slane %v618_v21, 1  ;;  %v1228_v8 = vpop.eup (%p351_p4), %1227 }
 0x266   : >> { %v815_v28 = vrot.slane %v814_v40, 4  ;;  %v874_v5 = vadd.f32 (%p351_p4), 1.0, %v1228_v8 }
 0x267   : >> { %v620_v46 = vadd.f32 %v619_v41, %v618_v21 }
 0x268   : >> { %v816_v48 = vadd.f32 %v815_v28, %v814_v40  ;;  %v1230_v9 = vpop.eup (%p351_p4), %1229  ;;  %1231 = vrcp.f32 (%p351_p4), %v874_v5  ;;  %vm881_vm8 = vweird.f32 (%p351_p4), %v874_v5  ;;  %v887_v16 = vand.u32 (%p351_p4), 2147483648, %v874_v5 }
 0x269   : >> { %v626_v49 = vadd.f32 %v625_v36, %v620_v46  ;;  %v875_v25 = vadd.f32 (%p351_p4), 1.0, %v1230_v9  ;;  %v885_v47 = vand.u32 (%p351_p4), 2147483647, %v874_v5 }
 0x26a   : >> { %v817_v51 = vrot.slane %v816_v48, 2  ;;  %v888_v18 = vor.u32 (%p351_p4), 1.1754944e-38, %v887_v16 }
 0x26b   : >> { %v831_v54 = vrot.slane %v626_v49, 6  ;;  %1233 = vrcp.f32 (%p351_p4), %v875_v25  ;;  %v902_v53 = vand.u32 (%p351_p4), 2147483648, %v875_v25  ;;  %vm896_vm10 = vweird.f32 (%p351_p4), %v875_v25 }
 0x26c   : >> { %v818_v57 = vadd.f32 %v817_v51, %v816_v48  ;;  %v900_v37 = vand.u32 (%p351_p4), 2147483647, %v875_v25  ;;  %vm886_vm13 = vcmp.eq.f32.partialorder (%p351_p4), %v885_v47, 8.507059e+37 }
 0x26d   : >> { %v851_v59 = vsel %vm850_vm2, %v849_v12, %v831_v54  ;;  %v903_v23 = vor.u32 (%p351_p4), 1.1754944e-38, %v902_v53 }
 0x26e   : >> { %v853_v42 = vsel %vm852_vm3, %v851_v59, %v834_v60  ;;  %v819_v58 = vrot.slane %v818_v57, 1  ;;  %v1232_v29 = vpop.eup (%p351_p4), %1231  ;;  %vm901_vm15 = vcmp.eq.f32.partialorder (%p351_p4), %v900_v37, 8.507059e+37 }
 0x26f   : >> { %v855_v0 = vsel %vm854_vm4, %v853_v42, %v837_v14  ;;  %v877_v30 = vmul.f32 (%p351_p4), %v1232_v29, %v874_v5  ;;  %vm882_vm9 = vweird.f32 (%p351_p4), %v1232_v29 }
 0x270   : >> { %v820_v38 = vadd.f32 %v819_v58, %v818_v57  ;;  %v857_v56 = vsel %vm856_vm5, %v855_v0, %v840_v6  ;;  %vm883_vm12 = vmor (%p351_p4), %vm881_vm8, %vm882_vm9 }
 0x271   : >> { %v859_v62 = vsel %vm858_vm6, %v857_v56, %v843_v22  ;;  %v1234_v31 = vpop.eup (%p351_p4), %1233  ;;  %v878_v32 = vsub.f32 (%p351_p4), 1.0, %v877_v30 }
 0x272   : >> { %v826_v11 = vadd.f32 %v825_v33, %v820_v38  ;;  %v892_v45 = vmul.f32 (%p351_p4), %v1234_v31, %v875_v25  ;;  %vm897_vm11 = vweird.f32 (%p351_p4), %v1234_v31 }
 0x273   : > { %353 = sbr.rel (!%p351_p4) target bundleno = 23 (0x17), region = 105  ;;  %v879_v39 = vmul.f32 (%p351_p4), %v1232_v29, %v878_v32  ;;  %vm898_vm14 = vmor (%p351_p4), %vm896_vm10, %vm897_vm11 }
 0x274   : >> { %v846_v63 = vrot.slane %v826_v11, 1  ;;  %v893_v61 = vsub.f32 (%p351_p4), 1.0, %v892_v45 }
 0x275   : > { %v880_v35 = vadd.f32 (%p351_p4), %v1232_v29, %v879_v39 }
 0x276   : >> { %v861_v3 = vsel %vm860_vm7, %v859_v62, %v846_v63  ;;  %v894_v27 = vmul.f32 (%p351_p4), %v1234_v31, %v893_v61 }
 0x277   : >> { %863 = vst.msk [vmem:[%s862_s19] sm:$0xff] %vm534_vm0, %v861_v3  ;;  %v884_v13 = vsel (%p351_p4), %vm883_vm12, %v1232_v29, %v880_v35 }
 0x278   : > { %v895_v4 = vadd.f32 %v1234_v31, %v894_v27  ;;  %v889_v21 = vsel %vm886_vm13, %v888_v18, %v884_v13 }
 0x279   : > { %v906_v41 = vmul.f32 %v889_v21, %v866_v1 }
 0x27a   : > { %v899_v20 = vsel %vm898_vm14, %v1234_v31, %v895_v4 }
 0x27b   : > { %v904_v40 = vsel %vm901_vm15, %v903_v23, %v899_v20 }
 0x27c   : > { %v907_v36 = vmul.f32 %v904_v40, %v867_v44 }
 0x27e   : > { %v864_v19 = vld [vmem:[#allocation2] sm:$0xff]  ;;  %v865_v12 = vld [vmem:[#allocation2 + $0x8] sm:$0xff] }
 0x27f   : > { %v908_v28 = vmul.f32 %v906_v41, %v864_v19  ;;  %v909_v15 = vmul.f32 %v907_v36, %v865_v12 }
 0x281   : > { %v910_v26 = vpack.c.bf16 %v909_v15, %v908_v28 }
 0x283   : > { %1106 = vmatmul.msk.bf16.vlgmr.msra.gmra.mxu0 %vm534_vm0, %v910_v26 }
 0x300   : > { %v956_v46 = vpop.f32.mrf.mxu0 }
 0x301   : > { %962 = vst.msk [vmem:[%s1359_s25] sm:$0xff] %vm961_vm1, %v956_v46 }
 0x308   : > { %v958_v48 = vpop.f32.mrf.mxu0 }
 0x309   : > { %963 = vst.msk [vmem:[%s1359_s25 + $0x8] sm:$0xff] %vm961_vm1, %v958_v48 }
 0x30a PF: > { %s17_s24 = sadd.s32 1, %s1253_s24  }
 0x30b   : > { %p14_p5 = scmp.ge.s32.totalorder %s17_s24, 4  }
 0x30d   :  { %16 = sbr.rel (!%p14_p5) target bundleno = 1 (0x1), region = 116 }

</bundles_post_ra>
